<compile_context>
chip_gen: v7x
topology: tpu7x:2x2x1
jax: 0.10.0
libtpu: 0.0.40
codegen_flags: <defaults>
</compile_context>

<pallas_src>
import functools

import numpy as np

import jax
import jax.numpy as jnp
from jax import lax
from jax.experimental import pallas as pl
from jax.experimental.pallas import tpu as pltpu


# ----------------------------------------------------------------------------
# Fused LeNet-5 kernel: one grid step = `tb` images, everything stays on-chip.
# ----------------------------------------------------------------------------
def _lenet5_kernel(xs1_ref, w1_ref, t1_ref, w2_ref, t2_ref,
                   wfc_ref, bfc_ref, wfc1_ref, bfc1_ref, wfc2_ref, bfc2_ref,
                   o_ref):
    tb = xs1_ref.shape[1]
    f32 = jnp.float32
    bf16 = jnp.bfloat16

    # ---- layer 1: conv(1->6,k5) + BN + ReLU + maxpool 2x2  (ONE matmul) -----
    # xs1 rows are (row-parity p, pooled row ohp, image b); w1 columns are
    # [even conv-col half | odd conv-col half], each 128-padded, with the BN
    # scale folded in.  Max over the two halves / two row parities == pool.
    xs1 = xs1_ref[...].reshape(28 * tb, 160)                        # bf16
    y1 = jnp.dot(xs1, w1_ref[...], preferred_element_type=f32)      # (28*tb, 256)
    y1 = y1.reshape(2, 14, tb, 256)
    z1 = jnp.maximum(y1[..., :128], y1[..., 128:])                  # col-parity max
    z1 = jnp.maximum(z1[0], z1[1])                                  # row-parity max
    p1 = jnp.maximum(z1 + t1_ref[...], 0.0)                         # shift + ReLU
    # p1: (14, tb, 128), columns = owp*6 + c (84 used, zero padded)

    # ---- layer 2: conv(6->16,k5) + BN + ReLU + maxpool 2x2  (ONE matmul) ----
    # Row-banded im2col built as a value: each kernel row i contributes one
    # 128-lane-aligned slab of p1 (pure vreg placement, no masked stores).
    p1r = p1.reshape(7, 2, tb, 128)                                 # (pair, parity, b, col)

    def band(o):        # p1 rows o, o+2, ..., o+8  ->  (5, tb, 128)
        return lax.slice_in_dim(p1r[:, o % 2], o // 2, o // 2 + 5, axis=0)

    xs2 = jnp.concatenate(
        [jnp.concatenate([band(p + i) for i in range(5)], axis=-1)
         for p in range(2)], axis=0)                                # (10, tb, 640) f32
    xs2 = xs2.astype(bf16).reshape(10 * tb, 640)
    y2 = jnp.dot(xs2, w2_ref[...], preferred_element_type=f32)      # (10*tb, 256)
    y2 = y2.reshape(2, 5, tb, 256)
    z2 = jnp.maximum(y2[..., :128], y2[..., 128:])
    z2 = jnp.maximum(z2[0], z2[1])                                  # (5, tb, 128)
    p2 = jnp.maximum(z2 + t2_ref[...], 0.0)
    # p2: (5, tb, 128), columns = owp2*16 + c2 (80 used, zero padded)

    # ---- flatten + MLP (all 128-lane padded; flatten perm folded into wfc) --
    flat = jnp.concatenate([p2[r] for r in range(5)], axis=-1)      # (tb, 640)
    h = jnp.dot(flat.astype(bf16), wfc_ref[...], preferred_element_type=f32)
    h = jnp.maximum(h + bfc_ref[...], 0.0)
    h = jnp.dot(h.astype(bf16), wfc1_ref[...], preferred_element_type=f32)
    h = jnp.maximum(h + bfc1_ref[...], 0.0)
    h = jnp.dot(h.astype(bf16), wfc2_ref[...], preferred_element_type=f32) + bfc2_ref[...]
    o_ref[...] = h.astype(o_ref.dtype)                              # (tb, 128) lane-dense


# ----------------------------------------------------------------------------
# Wrapper: one pallas_call over batch tiles.
# ----------------------------------------------------------------------------
def lenet5_forward(x_nchw, params, *, num_classes, tb=None):
    B = x_nchw.shape[0]
    assert x_nchw.shape[1:] == (1, 32, 32), "LeNet-5 expects (B, 1, 32, 32)"
    if tb is None:
        tb = 128 if B >= 128 else ((B + 15) // 16) * 16     # batch tile, mult of 16
    B_pad = ((B + tb - 1) // tb) * tb

    x = x_nchw.reshape(B, 32, 32).astype(jnp.float32)
    if B_pad != B:
        x = jnp.concatenate([x, jnp.zeros((B_pad - B, 32, 32), jnp.float32)], axis=0)

    # Lane-dense row-banded layer-1 im2col (tiny XLA gather in the wrapper):
    #   xs1[p*14 + ohp, b, i*32 + win] = x[b, 2*ohp + p + i, win]
    r = (np.arange(2)[:, None, None] + 2 * np.arange(14)[None, :, None]
         + np.arange(5)[None, None, :])                     # (2, 14, 5)
    xs1 = x[:, r, :]                                        # (B_pad, 2, 14, 5, 32)
    xs1 = xs1.reshape(B_pad, 2, 14, 160).transpose(1, 2, 0, 3)
    xs1 = xs1.reshape(28, B_pad, 160).astype(jnp.bfloat16)

    w_args = (params["w1"], params["t1"], params["w2"], params["t2"],
              params["wfc"], params["bfc"], params["wfc1"], params["bfc1"],
              params["wfc2"], params["bfc2"])

    def full_spec(a):
        return pl.BlockSpec(a.shape, lambda b, nd=a.ndim: (0,) * nd)

    out = pl.pallas_call(
        _lenet5_kernel,
        out_shape=jax.ShapeDtypeStruct((B_pad, 128), jnp.float32),
        grid=(B_pad // tb,),
        in_specs=[pl.BlockSpec((28, tb, 160), lambda b: (0, b, 0))]
                 + [full_spec(w) for w in w_args],
        out_specs=pl.BlockSpec((tb, 128), lambda b: (b, 0)),
        compiler_params=pltpu.CompilerParams(
            dimension_semantics=("parallel",),              # v7x: shard tiles on 2 TCs
            vmem_limit_bytes=32 * 1024 * 1024),
    )(xs1, *w_args)

    return out[:B, :num_classes]


# ----------------------------------------------------------------------------
# Deterministic parameters: PyTorch layout -> fused/banded/padded kernel layout
# ----------------------------------------------------------------------------
def make_params(key, num_classes):
    assert num_classes <= 128
    ks = jax.random.split(key, 14)
    eps = 1e-5

    def rnd(k, shape, s):
        return np.asarray(jax.random.normal(k, shape, jnp.float32)) * np.float32(s)

    # -- parameters in PyTorch layout (kept for the pure-JAX reference) -------
    wt1, cb1 = rnd(ks[0], (6, 1, 5, 5), 0.2), rnd(ks[1], (6,), 0.1)
    g1, be1 = np.float32(1.0) + rnd(ks[2], (6,), 0.1), rnd(ks[3], (6,), 0.1)
    rm1, rv1 = np.zeros((6,), np.float32), np.ones((6,), np.float32)

    wt2, cb2 = rnd(ks[4], (16, 6, 5, 5), 0.08), rnd(ks[5], (16,), 0.1)
    g2, be2 = np.float32(1.0) + rnd(ks[6], (16,), 0.1), rnd(ks[7], (16,), 0.1)
    rm2, rv2 = np.zeros((16,), np.float32), np.ones((16,), np.float32)

    wfc_t, bfc_t = rnd(ks[8], (120, 400), 0.05), rnd(ks[9], (120,), 0.05)
    wfc1_t, bfc1_t = rnd(ks[10], (84, 120), 0.09), rnd(ks[11], (84,), 0.05)
    wfc2_t, bfc2_t = (rnd(ks[12], (num_classes, 84), 0.11),
                      rnd(ks[13], (num_classes,), 0.05))

    torch_params = dict(wt1=wt1, cb1=cb1, g1=g1, be1=be1, rm1=rm1, rv1=rv1,
                        wt2=wt2, cb2=cb2, g2=g2, be2=be2, rm2=rm2, rv2=rv2,
                        wfc=wfc_t, bfc=bfc_t, wfc1=wfc1_t, bfc1=bfc1_t,
                        wfc2=wfc2_t, bfc2=bfc2_t)

    # -- fold inference BatchNorm (+ conv bias) into per-channel scale/shift --
    sc1 = g1 / np.sqrt(rv1 + eps); sh1 = be1 - rm1 * sc1 + cb1 * sc1
    sc2 = g2 / np.sqrt(rv2 + eps); sh2 = be2 - rm2 * sc2 + cb2 * sc2

    # -- layer-1 banded weight, BN scale folded, split by conv-column parity --
    #    w1[q][i*32 + win, owp*6 + c] = sc1[c] * wt1[c, 0, i, win - (2*owp + q)]
    w1 = np.zeros((2, 160, 128), np.float32)
    for q in range(2):
        for i in range(5):
            for owp in range(14):
                for j in range(5):
                    win = 2 * owp + q + j
                    w1[q, i * 32 + win, owp * 6:(owp + 1) * 6] = sc1 * wt1[:, 0, i, j]
    w1eo = np.concatenate([w1[0], w1[1]], axis=1)                  # (160, 256)
    t1 = np.zeros((1, 128), np.float32); t1[0, :84] = np.tile(sh1, 14)

    # -- layer-2 banded weight over the 128-padded p1 column layout -----------
    #    w2[q][i*128 + owp*6 + ci, owp2*16 + c2] =
    #        sc2[c2] * wt2[c2, ci, i, owp - (2*owp2 + q)]
    w2 = np.zeros((2, 640, 128), np.float32)
    for q in range(2):
        for i in range(5):
            for owp2 in range(5):
                for j in range(5):
                    owp = 2 * owp2 + q + j
                    w2[q, i * 128 + owp * 6:i * 128 + owp * 6 + 6,
                       owp2 * 16:(owp2 + 1) * 16] = wt2[:, :, i, j].T * sc2[None, :]
    w2eo = np.concatenate([w2[0], w2[1]], axis=1)                  # (640, 256)
    t2 = np.zeros((1, 128), np.float32); t2[0, :80] = np.tile(sh2, 5)

    # -- FC weights: fold the torch (c,oh,ow) flatten order into wfc rows and
    #    pad every FC dim to 128 lanes ----------------------------------------
    wfc = np.zeros((640, 128), np.float32)
    for oh in range(5):
        for ow in range(5):
            for c in range(16):
                wfc[oh * 128 + ow * 16 + c, :120] = wfc_t[:, c * 25 + oh * 5 + ow]
    bfc = np.zeros((1, 128), np.float32); bfc[0, :120] = bfc_t
    wfc1 = np.zeros((128, 128), np.float32); wfc1[:120, :84] = wfc1_t.T
    bfc1 = np.zeros((1, 128), np.float32); bfc1[0, :84] = bfc1_t
    wfc2 = np.zeros((128, 128), np.float32); wfc2[:84, :num_classes] = wfc2_t.T
    bfc2 = np.zeros((1, 128), np.float32); bfc2[0, :num_classes] = bfc2_t

    jb = lambda a: jnp.asarray(a, jnp.bfloat16)   # MXU operands
    jf = lambda a: jnp.asarray(a, jnp.float32)    # f32 epilogue shifts / biases
    kernel_params = dict(w1=jb(w1eo), t1=jf(t1), w2=jb(w2eo), t2=jf(t2),
                         wfc=jb(wfc), bfc=jf(bfc), wfc1=jb(wfc1), bfc1=jf(bfc1),
                         wfc2=jb(wfc2), bfc2=jf(bfc2))
    return kernel_params, torch_params


# ----------------------------------------------------------------------------
# Pure-JAX f32 reference of the PyTorch module (inference-mode BatchNorm).
# ----------------------------------------------------------------------------
def lenet5_reference(x_nchw, tp, num_classes):
    eps = 1e-5

    def conv(x, w, b):
        y = lax.conv_general_dilated(x, jnp.asarray(w), (1, 1), "VALID",
                                     dimension_numbers=("NCHW", "OIHW", "NCHW"))
        return y + jnp.asarray(b)[None, :, None, None]

    def bn(y, g, be, m, v):
        s = g / np.sqrt(v + eps)
        return y * s[None, :, None, None] + (be - m * s)[None, :, None, None]

    def pool(y):
        B, C, H, W = y.shape
        return y.reshape(B, C, H // 2, 2, W // 2, 2).max(axis=(3, 5))

    h = pool(jax.nn.relu(bn(conv(x_nchw, tp["wt1"], tp["cb1"]),
                            tp["g1"], tp["be1"], tp["rm1"], tp["rv1"])))
    h = pool(jax.nn.relu(bn(conv(h, tp["wt2"], tp["cb2"]),
                            tp["g2"], tp["be2"], tp["rm2"], tp["rv2"])))
    h = h.reshape(h.shape[0], -1)
    h = jax.nn.relu(h @ tp["wfc"].T + tp["bfc"])
    h = jax.nn.relu(h @ tp["wfc1"].T + tp["bfc1"])
    return h @ tp["wfc2"].T + tp["bfc2"]


if __name__ == "__main__":
    num_classes = 10
    batch = 8                                    # LeNet-5 fixes the 1x32x32 input
    key = jax.random.PRNGKey(0)
    k_x, k_p = jax.random.split(key)

    x = jax.random.normal(k_x, (batch, 1, 32, 32), jnp.float32)
    params, torch_params = make_params(k_p, num_classes)

    fwd = jax.jit(functools.partial(lenet5_forward, num_classes=num_classes))
    out = jax.block_until_ready(fwd(x, params))
    assert out.shape == (batch, num_classes)

    ref = lenet5_reference(x, torch_params, num_classes)
    err = float(jnp.max(jnp.abs(out - jnp.asarray(ref))))
    assert err < 5e-2, f"kernel/reference mismatch: max abs err {err}"
    print("KERNEL_OK")
</pallas_src>

<mosaic_0001>
module attributes {stable_mosaic.version = 11 : i64} {
  func.func @_lenet5_kernel(%arg0: i32, %arg1: memref<28x16x160xbf16, #tpu.memory_space<vmem>>, %arg2: memref<160x256xbf16, #tpu.memory_space<vmem>>, %arg3: memref<1x128xf32, #tpu.memory_space<vmem>>, %arg4: memref<640x256xbf16, #tpu.memory_space<vmem>>, %arg5: memref<1x128xf32, #tpu.memory_space<vmem>>, %arg6: memref<640x128xbf16, #tpu.memory_space<vmem>>, %arg7: memref<1x128xf32, #tpu.memory_space<vmem>>, %arg8: memref<128x128xbf16, #tpu.memory_space<vmem>>, %arg9: memref<1x128xf32, #tpu.memory_space<vmem>>, %arg10: memref<128x128xbf16, #tpu.memory_space<vmem>>, %arg11: memref<1x128xf32, #tpu.memory_space<vmem>>, %arg12: memref<16x128xf32, #tpu.memory_space<vmem>>) attributes {dimension_semantics = [#tpu.dimension_semantics<parallel>], iteration_bounds = array<i64: 1>, scalar_prefetch = 0 : i64, scratch_operands = 0 : i64, tpu.core_type = #tpu.core_type<tc>, window_params = [{transform_indices = @transform_0, window_bounds = array<i64: 28, 16, 160>}, {pipeline_mode = #tpu.pipeline_mode<synchronous>, transform_indices = @transform_1, window_bounds = array<i64: 160, 256>}, {pipeline_mode = #tpu.pipeline_mode<synchronous>, transform_indices = @transform_2, window_bounds = array<i64: 1, 128>}, {pipeline_mode = #tpu.pipeline_mode<synchronous>, transform_indices = @transform_3, window_bounds = array<i64: 640, 256>}, {pipeline_mode = #tpu.pipeline_mode<synchronous>, transform_indices = @transform_4, window_bounds = array<i64: 1, 128>}, {pipeline_mode = #tpu.pipeline_mode<synchronous>, transform_indices = @transform_5, window_bounds = array<i64: 640, 128>}, {pipeline_mode = #tpu.pipeline_mode<synchronous>, transform_indices = @transform_6, window_bounds = array<i64: 1, 128>}, {pipeline_mode = #tpu.pipeline_mode<synchronous>, transform_indices = @transform_7, window_bounds = array<i64: 128, 128>}, {pipeline_mode = #tpu.pipeline_mode<synchronous>, transform_indices = @transform_8, window_bounds = array<i64: 1, 128>}, {pipeline_mode = #tpu.pipeline_mode<synchronous>, transform_indices = @transform_9, window_bounds = array<i64: 128, 128>}, {pipeline_mode = #tpu.pipeline_mode<synchronous>, transform_indices = @transform_10, window_bounds = array<i64: 1, 128>}, {transform_indices = @transform_11, window_bounds = array<i64: 16, 128>}]} {
    %c0 = arith.constant 0 : index
    %c0_0 = arith.constant 0 : index
    %c0_1 = arith.constant 0 : index
    %0 = vector.load %arg1[%c0, %c0_0, %c0_1] : memref<28x16x160xbf16, #tpu.memory_space<vmem>>, vector<28x16x160xbf16>
    %1 = vector.shape_cast %0 : vector<28x16x160xbf16> to vector<448x160xbf16>
    %c0_2 = arith.constant 0 : index
    %c0_3 = arith.constant 0 : index
    %2 = vector.load %arg2[%c0_2, %c0_3] : memref<160x256xbf16, #tpu.memory_space<vmem>>, vector<160x256xbf16>
    %cst = arith.constant dense<0.000000e+00> : vector<448x256xf32>
    %3 = tpu.matmul %1, %2, %cst {dimension_numbers = #tpu.dot_dimension_numbers<[1], [0], [0], [1], [0, 0, 1, 1], [], []>} : vector<448x160xbf16>, vector<160x256xbf16>, vector<448x256xf32> -> vector<448x256xf32>
    %4 = vector.shape_cast %3 : vector<448x256xf32> to vector<2x14x16x256xf32>
    %5 = vector.extract_strided_slice %4 {offsets = [0, 0, 0, 0], sizes = [2, 14, 16, 128], strides = [1, 1, 1, 1]} : vector<2x14x16x256xf32> to vector<2x14x16x128xf32>
    %6 = vector.extract_strided_slice %4 {offsets = [0, 0, 0, 128], sizes = [2, 14, 16, 128], strides = [1, 1, 1, 1]} : vector<2x14x16x256xf32> to vector<2x14x16x128xf32>
    %7 = arith.maximumf %5, %6 : vector<2x14x16x128xf32>
    %8 = vector.extract_strided_slice %7 {offsets = [0, 0, 0, 0], sizes = [1, 14, 16, 128], strides = [1, 1, 1, 1]} : vector<2x14x16x128xf32> to vector<1x14x16x128xf32>
    %9 = vector.shape_cast %8 : vector<1x14x16x128xf32> to vector<14x16x128xf32>
    %10 = vector.extract_strided_slice %7 {offsets = [1, 0, 0, 0], sizes = [1, 14, 16, 128], strides = [1, 1, 1, 1]} : vector<2x14x16x128xf32> to vector<1x14x16x128xf32>
    %11 = vector.shape_cast %10 : vector<1x14x16x128xf32> to vector<14x16x128xf32>
    %12 = arith.maximumf %9, %11 : vector<14x16x128xf32>
    %c0_4 = arith.constant 0 : index
    %c0_5 = arith.constant 0 : index
    %13 = vector.load %arg3[%c0_4, %c0_5] : memref<1x128xf32, #tpu.memory_space<vmem>>, vector<1x128xf32>
    %14 = vector.shape_cast %13 : vector<1x128xf32> to vector<1x1x128xf32>
    %15 = vector.broadcast %14 : vector<1x1x128xf32> to vector<14x16x128xf32>
    %16 = arith.addf %12, %15 : vector<14x16x128xf32>
    %cst_6 = arith.constant 0.000000e+00 : f32
    %17 = vector.broadcast %cst_6 : f32 to vector<14x16x128xf32>
    %18 = arith.maximumf %16, %17 : vector<14x16x128xf32>
    %19 = vector.shape_cast %18 : vector<14x16x128xf32> to vector<7x2x16x128xf32>
    %20 = vector.extract_strided_slice %19 {offsets = [0, 0, 0, 0], sizes = [7, 1, 16, 128], strides = [1, 1, 1, 1]} : vector<7x2x16x128xf32> to vector<7x1x16x128xf32>
    %21 = vector.shape_cast %20 : vector<7x1x16x128xf32> to vector<7x16x128xf32>
    %22 = vector.extract_strided_slice %21 {offsets = [0, 0, 0], sizes = [5, 16, 128], strides = [1, 1, 1]} : vector<7x16x128xf32> to vector<5x16x128xf32>
    %23 = vector.extract_strided_slice %19 {offsets = [0, 1, 0, 0], sizes = [7, 1, 16, 128], strides = [1, 1, 1, 1]} : vector<7x2x16x128xf32> to vector<7x1x16x128xf32>
    %24 = vector.shape_cast %23 : vector<7x1x16x128xf32> to vector<7x16x128xf32>
    %25 = vector.extract_strided_slice %24 {offsets = [0, 0, 0], sizes = [5, 16, 128], strides = [1, 1, 1]} : vector<7x16x128xf32> to vector<5x16x128xf32>
    %26 = vector.extract_strided_slice %19 {offsets = [0, 0, 0, 0], sizes = [7, 1, 16, 128], strides = [1, 1, 1, 1]} : vector<7x2x16x128xf32> to vector<7x1x16x128xf32>
    %27 = vector.shape_cast %26 : vector<7x1x16x128xf32> to vector<7x16x128xf32>
    %28 = vector.extract_strided_slice %27 {offsets = [1, 0, 0], sizes = [5, 16, 128], strides = [1, 1, 1]} : vector<7x16x128xf32> to vector<5x16x128xf32>
    %29 = vector.extract_strided_slice %19 {offsets = [0, 1, 0, 0], sizes = [7, 1, 16, 128], strides = [1, 1, 1, 1]} : vector<7x2x16x128xf32> to vector<7x1x16x128xf32>
    %30 = vector.shape_cast %29 : vector<7x1x16x128xf32> to vector<7x16x128xf32>
    %31 = vector.extract_strided_slice %30 {offsets = [1, 0, 0], sizes = [5, 16, 128], strides = [1, 1, 1]} : vector<7x16x128xf32> to vector<5x16x128xf32>
    %32 = vector.extract_strided_slice %19 {offsets = [0, 0, 0, 0], sizes = [7, 1, 16, 128], strides = [1, 1, 1, 1]} : vector<7x2x16x128xf32> to vector<7x1x16x128xf32>
    %33 = vector.shape_cast %32 : vector<7x1x16x128xf32> to vector<7x16x128xf32>
    %34 = vector.extract_strided_slice %33 {offsets = [2, 0, 0], sizes = [5, 16, 128], strides = [1, 1, 1]} : vector<7x16x128xf32> to vector<5x16x128xf32>
    %35 = tpu.concatenate %22, %25, %28, %31, %34 in 2 : vector<5x16x128xf32>, vector<5x16x128xf32>, vector<5x16x128xf32>, vector<5x16x128xf32>, vector<5x16x128xf32> -> vector<5x16x640xf32>
    %36 = vector.extract_strided_slice %19 {offsets = [0, 1, 0, 0], sizes = [7, 1, 16, 128], strides = [1, 1, 1, 1]} : vector<7x2x16x128xf32> to vector<7x1x16x128xf32>
    %37 = vector.shape_cast %36 : vector<7x1x16x128xf32> to vector<7x16x128xf32>
    %38 = vector.extract_strided_slice %37 {offsets = [0, 0, 0], sizes = [5, 16, 128], strides = [1, 1, 1]} : vector<7x16x128xf32> to vector<5x16x128xf32>
    %39 = vector.extract_strided_slice %19 {offsets = [0, 0, 0, 0], sizes = [7, 1, 16, 128], strides = [1, 1, 1, 1]} : vector<7x2x16x128xf32> to vector<7x1x16x128xf32>
    %40 = vector.shape_cast %39 : vector<7x1x16x128xf32> to vector<7x16x128xf32>
    %41 = vector.extract_strided_slice %40 {offsets = [1, 0, 0], sizes = [5, 16, 128], strides = [1, 1, 1]} : vector<7x16x128xf32> to vector<5x16x128xf32>
    %42 = vector.extract_strided_slice %19 {offsets = [0, 1, 0, 0], sizes = [7, 1, 16, 128], strides = [1, 1, 1, 1]} : vector<7x2x16x128xf32> to vector<7x1x16x128xf32>
    %43 = vector.shape_cast %42 : vector<7x1x16x128xf32> to vector<7x16x128xf32>
    %44 = vector.extract_strided_slice %43 {offsets = [1, 0, 0], sizes = [5, 16, 128], strides = [1, 1, 1]} : vector<7x16x128xf32> to vector<5x16x128xf32>
    %45 = vector.extract_strided_slice %19 {offsets = [0, 0, 0, 0], sizes = [7, 1, 16, 128], strides = [1, 1, 1, 1]} : vector<7x2x16x128xf32> to vector<7x1x16x128xf32>
    %46 = vector.shape_cast %45 : vector<7x1x16x128xf32> to vector<7x16x128xf32>
    %47 = vector.extract_strided_slice %46 {offsets = [2, 0, 0], sizes = [5, 16, 128], strides = [1, 1, 1]} : vector<7x16x128xf32> to vector<5x16x128xf32>
    %48 = vector.extract_strided_slice %19 {offsets = [0, 1, 0, 0], sizes = [7, 1, 16, 128], strides = [1, 1, 1, 1]} : vector<7x2x16x128xf32> to vector<7x1x16x128xf32>
    %49 = vector.shape_cast %48 : vector<7x1x16x128xf32> to vector<7x16x128xf32>
    %50 = vector.extract_strided_slice %49 {offsets = [2, 0, 0], sizes = [5, 16, 128], strides = [1, 1, 1]} : vector<7x16x128xf32> to vector<5x16x128xf32>
    %51 = tpu.concatenate %38, %41, %44, %47, %50 in 2 : vector<5x16x128xf32>, vector<5x16x128xf32>, vector<5x16x128xf32>, vector<5x16x128xf32>, vector<5x16x128xf32> -> vector<5x16x640xf32>
    %52 = tpu.concatenate %35, %51 in 0 : vector<5x16x640xf32>, vector<5x16x640xf32> -> vector<10x16x640xf32>
    %53 = arith.truncf %52 : vector<10x16x640xf32> to vector<10x16x640xbf16>
    %54 = vector.shape_cast %53 : vector<10x16x640xbf16> to vector<160x640xbf16>
    %c0_7 = arith.constant 0 : index
    %c0_8 = arith.constant 0 : index
    %55 = vector.load %arg4[%c0_7, %c0_8] : memref<640x256xbf16, #tpu.memory_space<vmem>>, vector<640x256xbf16>
    %cst_9 = arith.constant dense<0.000000e+00> : vector<160x256xf32>
    %56 = tpu.matmul %54, %55, %cst_9 {dimension_numbers = #tpu.dot_dimension_numbers<[1], [0], [0], [1], [0, 0, 1, 1], [], []>} : vector<160x640xbf16>, vector<640x256xbf16>, vector<160x256xf32> -> vector<160x256xf32>
    %57 = vector.shape_cast %56 : vector<160x256xf32> to vector<2x5x16x256xf32>
    %58 = vector.extract_strided_slice %57 {offsets = [0, 0, 0, 0], sizes = [2, 5, 16, 128], strides = [1, 1, 1, 1]} : vector<2x5x16x256xf32> to vector<2x5x16x128xf32>
    %59 = vector.extract_strided_slice %57 {offsets = [0, 0, 0, 128], sizes = [2, 5, 16, 128], strides = [1, 1, 1, 1]} : vector<2x5x16x256xf32> to vector<2x5x16x128xf32>
    %60 = arith.maximumf %58, %59 : vector<2x5x16x128xf32>
    %61 = vector.extract_strided_slice %60 {offsets = [0, 0, 0, 0], sizes = [1, 5, 16, 128], strides = [1, 1, 1, 1]} : vector<2x5x16x128xf32> to vector<1x5x16x128xf32>
    %62 = vector.shape_cast %61 : vector<1x5x16x128xf32> to vector<5x16x128xf32>
    %63 = vector.extract_strided_slice %60 {offsets = [1, 0, 0, 0], sizes = [1, 5, 16, 128], strides = [1, 1, 1, 1]} : vector<2x5x16x128xf32> to vector<1x5x16x128xf32>
    %64 = vector.shape_cast %63 : vector<1x5x16x128xf32> to vector<5x16x128xf32>
    %65 = arith.maximumf %62, %64 : vector<5x16x128xf32>
    %c0_10 = arith.constant 0 : index
    %c0_11 = arith.constant 0 : index
    %66 = vector.load %arg5[%c0_10, %c0_11] : memref<1x128xf32, #tpu.memory_space<vmem>>, vector<1x128xf32>
    %67 = vector.shape_cast %66 : vector<1x128xf32> to vector<1x1x128xf32>
    %68 = vector.broadcast %67 : vector<1x1x128xf32> to vector<5x16x128xf32>
    %69 = arith.addf %65, %68 : vector<5x16x128xf32>
    %cst_12 = arith.constant 0.000000e+00 : f32
    %70 = vector.broadcast %cst_12 : f32 to vector<5x16x128xf32>
    %71 = arith.maximumf %69, %70 : vector<5x16x128xf32>
    %72 = vector.extract_strided_slice %71 {offsets = [0, 0, 0], sizes = [1, 16, 128], strides = [1, 1, 1]} : vector<5x16x128xf32> to vector<1x16x128xf32>
    %73 = vector.shape_cast %72 : vector<1x16x128xf32> to vector<16x128xf32>
    %74 = vector.extract_strided_slice %71 {offsets = [1, 0, 0], sizes = [1, 16, 128], strides = [1, 1, 1]} : vector<5x16x128xf32> to vector<1x16x128xf32>
    %75 = vector.shape_cast %74 : vector<1x16x128xf32> to vector<16x128xf32>
    %76 = vector.extract_strided_slice %71 {offsets = [2, 0, 0], sizes = [1, 16, 128], strides = [1, 1, 1]} : vector<5x16x128xf32> to vector<1x16x128xf32>
    %77 = vector.shape_cast %76 : vector<1x16x128xf32> to vector<16x128xf32>
    %78 = vector.extract_strided_slice %71 {offsets = [3, 0, 0], sizes = [1, 16, 128], strides = [1, 1, 1]} : vector<5x16x128xf32> to vector<1x16x128xf32>
    %79 = vector.shape_cast %78 : vector<1x16x128xf32> to vector<16x128xf32>
    %80 = vector.extract_strided_slice %71 {offsets = [4, 0, 0], sizes = [1, 16, 128], strides = [1, 1, 1]} : vector<5x16x128xf32> to vector<1x16x128xf32>
    %81 = vector.shape_cast %80 : vector<1x16x128xf32> to vector<16x128xf32>
    %82 = tpu.concatenate %73, %75, %77, %79, %81 in 1 : vector<16x128xf32>, vector<16x128xf32>, vector<16x128xf32>, vector<16x128xf32>, vector<16x128xf32> -> vector<16x640xf32>
    %83 = arith.truncf %82 : vector<16x640xf32> to vector<16x640xbf16>
    %c0_13 = arith.constant 0 : index
    %c0_14 = arith.constant 0 : index
    %84 = vector.load %arg6[%c0_13, %c0_14] : memref<640x128xbf16, #tpu.memory_space<vmem>>, vector<640x128xbf16>
    %cst_15 = arith.constant dense<0.000000e+00> : vector<16x128xf32>
    %85 = tpu.matmul %83, %84, %cst_15 {dimension_numbers = #tpu.dot_dimension_numbers<[1], [0], [0], [1], [0, 0, 1, 1], [], []>} : vector<16x640xbf16>, vector<640x128xbf16>, vector<16x128xf32> -> vector<16x128xf32>
    %c0_16 = arith.constant 0 : index
    %c0_17 = arith.constant 0 : index
    %86 = vector.load %arg7[%c0_16, %c0_17] : memref<1x128xf32, #tpu.memory_space<vmem>>, vector<1x128xf32>
    %87 = vector.broadcast %86 : vector<1x128xf32> to vector<16x128xf32>
    %88 = arith.addf %85, %87 : vector<16x128xf32>
    %cst_18 = arith.constant 0.000000e+00 : f32
    %89 = vector.broadcast %cst_18 : f32 to vector<16x128xf32>
    %90 = arith.maximumf %88, %89 : vector<16x128xf32>
    %91 = arith.truncf %90 : vector<16x128xf32> to vector<16x128xbf16>
    %c0_19 = arith.constant 0 : index
    %c0_20 = arith.constant 0 : index
    %92 = vector.load %arg8[%c0_19, %c0_20] : memref<128x128xbf16, #tpu.memory_space<vmem>>, vector<128x128xbf16>
    %cst_21 = arith.constant dense<0.000000e+00> : vector<16x128xf32>
    %93 = tpu.matmul %91, %92, %cst_21 {dimension_numbers = #tpu.dot_dimension_numbers<[1], [0], [0], [1], [0, 0, 1, 1], [], []>} : vector<16x128xbf16>, vector<128x128xbf16>, vector<16x128xf32> -> vector<16x128xf32>
    %c0_22 = arith.constant 0 : index
    %c0_23 = arith.constant 0 : index
    %94 = vector.load %arg9[%c0_22, %c0_23] : memref<1x128xf32, #tpu.memory_space<vmem>>, vector<1x128xf32>
    %95 = vector.broadcast %94 : vector<1x128xf32> to vector<16x128xf32>
    %96 = arith.addf %93, %95 : vector<16x128xf32>
    %cst_24 = arith.constant 0.000000e+00 : f32
    %97 = vector.broadcast %cst_24 : f32 to vector<16x128xf32>
    %98 = arith.maximumf %96, %97 : vector<16x128xf32>
    %99 = arith.truncf %98 : vector<16x128xf32> to vector<16x128xbf16>
    %c0_25 = arith.constant 0 : index
    %c0_26 = arith.constant 0 : index
    %100 = vector.load %arg10[%c0_25, %c0_26] : memref<128x128xbf16, #tpu.memory_space<vmem>>, vector<128x128xbf16>
    %cst_27 = arith.constant dense<0.000000e+00> : vector<16x128xf32>
    %101 = tpu.matmul %99, %100, %cst_27 {dimension_numbers = #tpu.dot_dimension_numbers<[1], [0], [0], [1], [0, 0, 1, 1], [], []>} : vector<16x128xbf16>, vector<128x128xbf16>, vector<16x128xf32> -> vector<16x128xf32>
    %c0_28 = arith.constant 0 : index
    %c0_29 = arith.constant 0 : index
    %102 = vector.load %arg11[%c0_28, %c0_29] : memref<1x128xf32, #tpu.memory_space<vmem>>, vector<1x128xf32>
    %103 = vector.broadcast %102 : vector<1x128xf32> to vector<16x128xf32>
    %104 = arith.addf %101, %103 : vector<16x128xf32>
    %c0_30 = arith.constant 0 : index
    %c0_31 = arith.constant 0 : index
    %105 = vector.load %arg12[%c0_30, %c0_31] : memref<16x128xf32, #tpu.memory_space<vmem>>, vector<16x128xf32>
    tpu.vector_store %arg12[%c0_30, %c0_31], %104 {strides = array<i32>} : memref<16x128xf32, #tpu.memory_space<vmem>>, vector<16x128xf32>,
    return
  }
  func.func @transform_0(%arg0: i32) -> (i32, i32, i32) {
    %c0_i32 = arith.constant 0 : i32
    %c0_i32_0 = arith.constant 0 : i32
    %c0_i32_1 = arith.constant 0 : i32
    return %c0_i32, %arg0, %c0_i32_0 : i32, i32, i32
  }
  func.func @transform_1(%arg0: i32) -> (i32, i32) {
    %c0_i32 = arith.constant 0 : i32
    %c0_i32_0 = arith.constant 0 : i32
    %c0_i32_1 = arith.constant 0 : i32
    return %c0_i32, %c0_i32_0 : i32, i32
  }
  func.func @transform_2(%arg0: i32) -> (i32, i32) {
    %c0_i32 = arith.constant 0 : i32
    %c0_i32_0 = arith.constant 0 : i32
    %c0_i32_1 = arith.constant 0 : i32
    return %c0_i32, %c0_i32_0 : i32, i32
  }
  func.func @transform_3(%arg0: i32) -> (i32, i32) {
    %c0_i32 = arith.constant 0 : i32
    %c0_i32_0 = arith.constant 0 : i32
    %c0_i32_1 = arith.constant 0 : i32
    return %c0_i32, %c0_i32_0 : i32, i32
  }
  func.func @transform_4(%arg0: i32) -> (i32, i32) {
    %c0_i32 = arith.constant 0 : i32
    %c0_i32_0 = arith.constant 0 : i32
    %c0_i32_1 = arith.constant 0 : i32
    return %c0_i32, %c0_i32_0 : i32, i32
  }
  func.func @transform_5(%arg0: i32) -> (i32, i32) {
    %c0_i32 = arith.constant 0 : i32
    %c0_i32_0 = arith.constant 0 : i32
    %c0_i32_1 = arith.constant 0 : i32
    return %c0_i32, %c0_i32_0 : i32, i32
  }
  func.func @transform_6(%arg0: i32) -> (i32, i32) {
    %c0_i32 = arith.constant 0 : i32
    %c0_i32_0 = arith.constant 0 : i32
    %c0_i32_1 = arith.constant 0 : i32
    return %c0_i32, %c0_i32_0 : i32, i32
  }
  func.func @transform_7(%arg0: i32) -> (i32, i32) {
    %c0_i32 = arith.constant 0 : i32
    %c0_i32_0 = arith.constant 0 : i32
    %c0_i32_1 = arith.constant 0 : i32
    return %c0_i32, %c0_i32_0 : i32, i32
  }
  func.func @transform_8(%arg0: i32) -> (i32, i32) {
    %c0_i32 = arith.constant 0 : i32
    %c0_i32_0 = arith.constant 0 : i32
    %c0_i32_1 = arith.constant 0 : i32
    return %c0_i32, %c0_i32_0 : i32, i32
  }
  func.func @transform_9(%arg0: i32) -> (i32, i32) {
    %c0_i32 = arith.constant 0 : i32
    %c0_i32_0 = arith.constant 0 : i32
    %c0_i32_1 = arith.constant 0 : i32
    return %c0_i32, %c0_i32_0 : i32, i32
  }
  func.func @transform_10(%arg0: i32) -> (i32, i32) {
    %c0_i32 = arith.constant 0 : i32
    %c0_i32_0 = arith.constant 0 : i32
    %c0_i32_1 = arith.constant 0 : i32
    return %c0_i32, %c0_i32_0 : i32, i32
  }
  func.func @transform_11(%arg0: i32) -> (i32, i32) {
    %c0_i32 = arith.constant 0 : i32
    %c0_i32_0 = arith.constant 0 : i32
    return %arg0, %c0_i32 : i32, i32
  }
}

</mosaic_0001>

<bundles_post_ra>
// kernel: lenet5_forward.1
= control target key start
LH: loop header
LB: loop body
LE: loop exit
PB: predicated region body
PF: predicated region fallthrough
CT: control target
= control target key end

     0   :  { %vm467_vm0 = vcmask 261120   ;;  %vm3404_vm1 = vmmov 0   ;;  %s4585_s1 = inlined_call_operand.vmem [shape: bf16[160,256], index: 1, kind: input, shape index: {}]   ;;  %s4586_s0 = inlined_call_operand.vmem [shape: bf16[28,16,160], index: 0, kind: input, shape index: {}]   ;;  %s4587_s3 = inlined_call_operand.vmem [shape: bf16[640,256], index: 3, kind: input, shape index: {}]   ;;  %s4588_s2 = inlined_call_operand.vmem [shape: f32[1,128], index: 2, kind: input, shape index: {}]   ;;  %s4589_s5 = inlined_call_operand.vmem [shape: bf16[640,128], index: 5, kind: input, shape index: {}]   ;;  %s4590_s4 = inlined_call_operand.vmem [shape: f32[1,128], index: 4, kind: input, shape index: {}]   ;;  %s4591_s7 = inlined_call_operand.vmem [shape: bf16[128,128], index: 7, kind: input, shape index: {}]   ;;  %s4592_s9 = inlined_call_operand.vmem [shape: bf16[128,128], index: 9, kind: input, shape index: {}]   ;;  %s4593_s6 = inlined_call_operand.vmem [shape: f32[1,128], index: 6, kind: input, shape index: {}]   ;;  %s4594_s8 = inlined_call_operand.vmem [shape: f32[1,128], index: 8, kind: input, shape index: {}]   ;;  %s4595_s10 = inlined_call_operand.vmem [shape: f32[1,128], index: 10, kind: input, shape index: {}]   ;;  %s4596_s11 = inlined_call_operand.vmem [shape: f32[16,128], index: 11, kind: output, shape index: {}]  }
   0x1   :  { %v3112_v0 = vld [vmem:[%s4585_s1 + $0x4] ss:$8 sps:$4 sm:$0xff]   ;;  %v3114_v1 = vld [vmem:[%s4585_s1] ss:$8 sps:$4 sm:$0xff]   ;;  %v3115_v2 = vld [vmem:[%s4585_s1 + $0x14] ss:$8 sps:$4 sm:$0xff]  }
   0x2   :  { %552 = vmatprep.subr.bf16.mxu0 %v3112_v0  ;;  %v3117_v3 = vld [vmem:[%s4585_s1 + $0x10] ss:$8 sps:$4 sm:$0xff]   ;;  %v3118_v4 = vld [vmem:[%s4585_s1 + $0x24] ss:$8 sps:$4 sm:$0xff]   ;;  %v3120_v5 = vld [vmem:[%s4585_s1 + $0x20] ss:$8 sps:$4 sm:$0xff]  }
   0x3   :  { %553 = vmatpush1.bf16.msra.mxu0 %v3114_v1  ;;  %v3121_v6 = vld [vmem:[%s4585_s1 + $0x34] ss:$8 sps:$4 sm:$0xff]   ;;  %v3123_v7 = vld [vmem:[%s4585_s1 + $0x30] ss:$8 sps:$4 sm:$0xff]   ;;  %v3124_v8 = vld [vmem:[%s4585_s1 + $0x44] ss:$8 sps:$4 sm:$0xff]  }
   0x4   :  { %554 = vmatprep.subr.bf16.mxu0 %v3115_v2  ;;  %v3144_v9 = vld [vmem:[%s4586_s0 + $0x4] ss:$8 sps:$4 sm:$0xff]   ;;  %v3126_v10 = vld [vmem:[%s4585_s1 + $0x40] ss:$8 sps:$4 sm:$0xff]   ;;  %v3127_v11 = vld [vmem:[%s4585_s1 + $0x54] ss:$8 sps:$4 sm:$0xff]  }
   0x5   :  { %2729 = vmatprep.mubr.msk.bf16.mxu0 %vm467_vm0, %v3144_v9  ;;  %v3129_v12 = vld [vmem:[%s4585_s1 + $0x50] ss:$8 sps:$4 sm:$0xff]   ;;  %v3130_v13 = vld [vmem:[%s4585_s1 + $0x64] ss:$8 sps:$4 sm:$0xff]   ;;  %v3132_v14 = vld [vmem:[%s4585_s1 + $0x60] ss:$8 sps:$4 sm:$0xff]  }
   0x6   :  { %v3133_v15 = vld [vmem:[%s4585_s1 + $0x74] ss:$8 sps:$4 sm:$0xff]   ;;  %v3135_v16 = vld [vmem:[%s4585_s1 + $0x70] ss:$8 sps:$4 sm:$0xff]   ;;  %v3136_v17 = vld [vmem:[%s4585_s1 + $0x84] ss:$8 sps:$4 sm:$0xff]  }
   0x7   :  { %555 = vmatpush1.bf16.msra.mxu0 %v3117_v3  ;;  %v3138_v18 = vld [vmem:[%s4585_s1 + $0x80] ss:$8 sps:$4 sm:$0xff]   ;;  %v3139_v19 = vld [vmem:[%s4585_s1 + $0x94] ss:$8 sps:$4 sm:$0xff]   ;;  %v3141_v20 = vld [vmem:[%s4585_s1 + $0x90] ss:$8 sps:$4 sm:$0xff]  }
   0x8   :  { %556 = vmatprep.subr.bf16.mxu0 %v3118_v4  ;;  %v3142_v21 = vld [vmem:[%s4586_s0] ss:$8 sps:$4 sm:$0xff]   ;;  %v3145_v22 = vld [vmem:[%s4586_s0 + $0x14] ss:$8 sps:$4 sm:$0xff]   ;;  %v3147_v23 = vld [vmem:[%s4586_s0 + $0x10] ss:$8 sps:$4 sm:$0xff]  }
   0x9   :  { %v3148_v24 = vld [vmem:[%s4586_s0 + $0x24] ss:$8 sps:$4 sm:$0xff]   ;;  %v3150_v25 = vld [vmem:[%s4586_s0 + $0x20] ss:$8 sps:$4 sm:$0xff]   ;;  %v3151_v26 = vld [vmem:[%s4586_s0 + $0x34] ss:$8 sps:$4 sm:$0xff]  }
   0xa   :  { %v3153_v27 = vld [vmem:[%s4586_s0 + $0x30] ss:$8 sps:$4 sm:$0xff]   ;;  %v3154_v28 = vld [vmem:[%s4586_s0 + $0x44] ss:$8 sps:$4 sm:$0xff]   ;;  %v3156_v29 = vld [vmem:[%s4586_s0 + $0x40] ss:$8 sps:$4 sm:$0xff]  }
   0xb   :  { %557 = vmatpush1.bf16.msra.mxu0 %v3120_v5  ;;  %v3157_v30 = vld [vmem:[%s4586_s0 + $0x54] ss:$8 sps:$4 sm:$0xff]   ;;  %v3159_v31 = vld [vmem:[%s4586_s0 + $0x50] ss:$8 sps:$4 sm:$0xff]   ;;  %v3160_v32 = vld [vmem:[%s4586_s0 + $0x64] ss:$8 sps:$4 sm:$0xff]  }
   0xc   :  { %558 = vmatprep.subr.bf16.mxu0 %v3121_v6  ;;  %v3162_v33 = vld [vmem:[%s4586_s0 + $0x60] ss:$8 sps:$4 sm:$0xff]   ;;  %v3163_v34 = vld [vmem:[%s4586_s0 + $0x74] ss:$8 sps:$4 sm:$0xff]   ;;  %v3165_v35 = vld [vmem:[%s4586_s0 + $0x70] ss:$8 sps:$4 sm:$0xff]  }
   0xd   :  { %v3166_v36 = vld [vmem:[%s4586_s0 + $0x84] ss:$8 sps:$4 sm:$0xff]   ;;  %v3168_v37 = vld [vmem:[%s4586_s0 + $0x80] ss:$8 sps:$4 sm:$0xff]   ;;  %v3169_v38 = vld [vmem:[%s4586_s0 + $0x94] ss:$8 sps:$4 sm:$0xff]  }
   0xe   :  { %v3171_v39 = vld [vmem:[%s4586_s0 + $0x90] ss:$8 sps:$4 sm:$0xff]   ;;  %v3172_v40 = vld [vmem:[%s4586_s0 + $0xa4] ss:$8 sps:$4 sm:$0xff]   ;;  %v3174_v41 = vld [vmem:[%s4586_s0 + $0xa0] ss:$8 sps:$4 sm:$0xff]  }
   0xf   :  { %559 = vmatpush1.bf16.msra.mxu0 %v3123_v7  ;;  %v3175_v42 = vld [vmem:[%s4586_s0 + $0xb4] ss:$8 sps:$4 sm:$0xff]   ;;  %v3177_v43 = vld [vmem:[%s4586_s0 + $0xb0] ss:$8 sps:$4 sm:$0xff]   ;;  %v3178_v44 = vld [vmem:[%s4586_s0 + $0xc4] ss:$8 sps:$4 sm:$0xff]  }
  0x10   :  { %560 = vmatprep.subr.bf16.mxu0 %v3124_v8  ;;  %v3180_v45 = vld [vmem:[%s4586_s0 + $0xc0] ss:$8 sps:$4 sm:$0xff]   ;;  %v3181_v46 = vld [vmem:[%s4586_s0 + $0xd4] ss:$8 sps:$4 sm:$0xff]   ;;  %v3183_v47 = vld [vmem:[%s4586_s0 + $0xd0] ss:$8 sps:$4 sm:$0xff]  }
  0x11   :  { %v3184_v48 = vld [vmem:[%s4586_s0 + $0xe4] ss:$8 sps:$4 sm:$0xff]   ;;  %v3186_v49 = vld [vmem:[%s4586_s0 + $0xe0] ss:$8 sps:$4 sm:$0xff]   ;;  %v3187_v50 = vld [vmem:[%s4586_s0 + $0xf4] ss:$8 sps:$4 sm:$0xff]  }
  0x12   :  { %v3189_v51 = vld [vmem:[%s4586_s0 + $0xf0] ss:$8 sps:$4 sm:$0xff]   ;;  %v3190_v52 = vld [vmem:[%s4586_s0 + $0x104] ss:$8 sps:$4 sm:$0xff]   ;;  %v3192_v53 = vld [vmem:[%s4586_s0 + $0x100] ss:$8 sps:$4 sm:$0xff]  }
  0x13   :  { %561 = vmatpush1.bf16.msra.mxu0 %v3126_v10  ;;  %v3193_v54 = vld [vmem:[%s4586_s0 + $0x114] ss:$8 sps:$4 sm:$0xff]   ;;  %v3195_v55 = vld [vmem:[%s4586_s0 + $0x110] ss:$8 sps:$4 sm:$0xff]   ;;  %v3196_v56 = vld [vmem:[%s4586_s0 + $0x124] ss:$8 sps:$4 sm:$0xff]  }
  0x14   :  { %562 = vmatprep.subr.bf16.mxu0 %v3127_v11  ;;  %v3198_v57 = vld [vmem:[%s4586_s0 + $0x120] ss:$8 sps:$4 sm:$0xff]   ;;  %v3199_v58 = vld [vmem:[%s4586_s0 + $0x134] ss:$8 sps:$4 sm:$0xff]   ;;  %v3201_v59 = vld [vmem:[%s4586_s0 + $0x130] ss:$8 sps:$4 sm:$0xff]  }
  0x15   :  { %v3202_v60 = vld [vmem:[%s4586_s0 + $0x144] ss:$8 sps:$4 sm:$0xff]   ;;  %v3228_v62 = vld [vmem:[%s4587_s3] ss:$8 sps:$4 sm:$0xff]   ;;  %v3205_v0 = vld [vmem:[%s4586_s0 + $0x154] ss:$8 sps:$4 sm:$0xff]  }
  0x16   :  { %v3226_v61 = vld [vmem:[%s4587_s3 + $0x4] ss:$8 sps:$4 sm:$0xff]   ;;  %v3204_v63 = vld [vmem:[%s4586_s0 + $0x140] ss:$8 sps:$4 sm:$0xff]   ;;  %v3229_v1 = vld [vmem:[%s4587_s3 + $0x14] ss:$8 sps:$4 sm:$0xff]  }
  0x17   :  { %563 = vmatpush1.bf16.msra.mxu0 %v3129_v12  ;;  %1506 = vmatprep.subr.bf16.mxu1 %v3226_v61  ;;  %v3231_v2 = vld [vmem:[%s4587_s3 + $0x10] ss:$8 sps:$4 sm:$0xff]   ;;  %v3232_v3 = vld [vmem:[%s4587_s3 + $0x24] ss:$8 sps:$4 sm:$0xff]   ;;  %v3234_v4 = vld [vmem:[%s4587_s3 + $0x20] ss:$8 sps:$4 sm:$0xff]  }
  0x18   :  { %564 = vmatprep.subr.bf16.mxu0 %v3130_v13  ;;  %1507 = vmatpush1.bf16.msra.mxu1 %v3228_v62  ;;  %v3207_v5 = vld [vmem:[%s4586_s0 + $0x150] ss:$8 sps:$4 sm:$0xff]   ;;  %v3208_v6 = vld [vmem:[%s4586_s0 + $0x164] ss:$8 sps:$4 sm:$0xff]   ;;  %v3235_v7 = vld [vmem:[%s4587_s3 + $0x34] ss:$8 sps:$4 sm:$0xff]  }
  0x19   :  { %1508 = vmatprep.subr.bf16.mxu1 %v3229_v1  ;;  %v3237_v8 = vld [vmem:[%s4587_s3 + $0x30] ss:$8 sps:$4 sm:$0xff]   ;;  %v3238_v9 = vld [vmem:[%s4587_s3 + $0x44] ss:$8 sps:$4 sm:$0xff]   ;;  %v3240_v10 = vld [vmem:[%s4587_s3 + $0x40] ss:$8 sps:$4 sm:$0xff]  }
  0x1a   :  { %v3210_v11 = vld [vmem:[%s4586_s0 + $0x160] ss:$8 sps:$4 sm:$0xff]   ;;  %v3211_v12 = vld [vmem:[%s4586_s0 + $0x174] ss:$8 sps:$4 sm:$0xff]  }
  0x1b   :  { %565 = vmatpush1.bf16.msra.mxu0 %v3132_v14  ;;  %v3241_v13 = vld [vmem:[%s4587_s3 + $0x54] ss:$8 sps:$4 sm:$0xff]   ;;  %v3243_v14 = vld [vmem:[%s4587_s3 + $0x50] ss:$8 sps:$4 sm:$0xff]  }
  0x1c   :  { %566 = vmatprep.subr.bf16.mxu0 %v3133_v15  ;;  %1509 = vmatpush1.bf16.msra.mxu1 %v3231_v2  ;;  %v3244_v15 = vld [vmem:[%s4587_s3 + $0x64] ss:$8 sps:$4 sm:$0xff]  }
  0x1d   :  { %1510 = vmatprep.subr.bf16.mxu1 %v3232_v3 }
  0x1f   :  { %567 = vmatpush1.bf16.msra.mxu0 %v3135_v16  ;;  %v3246_v16 = vld [vmem:[%s4587_s3 + $0x60] ss:$8 sps:$4 sm:$0xff]  }
  0x20   :  { %568 = vmatprep.subr.bf16.mxu0 %v3136_v17  ;;  %1511 = vmatpush1.bf16.msra.mxu1 %v3234_v4  ;;  %v3213_v17 = vld [vmem:[%s4586_s0 + $0x170] ss:$8 sps:$4 sm:$0xff]  }
  0x21   :  { %1512 = vmatprep.subr.bf16.mxu1 %v3235_v7 }
  0x23   :  { %569 = vmatpush1.bf16.msra.mxu0 %v3138_v18  ;;  %v3214_v18 = vld [vmem:[%s4586_s0 + $0x184] ss:$8 sps:$4 sm:$0xff]  }
  0x24   :  { %570 = vmatprep.subr.bf16.mxu0 %v3139_v19  ;;  %1513 = vmatpush1.bf16.msra.mxu1 %v3237_v8  ;;  %v3247_v19 = vld [vmem:[%s4587_s3 + $0x74] ss:$8 sps:$4 sm:$0xff]  }
  0x25   :  { %1514 = vmatprep.subr.bf16.mxu1 %v3238_v9 }
  0x27   :  { %571 = vmatpush1.bf16.msra.mxu0 %v3141_v20  ;;  %v3249_v20 = vld [vmem:[%s4587_s3 + $0x70] ss:$8 sps:$4 sm:$0xff]  }
  0x28   :  { %1515 = vmatpush1.bf16.msra.mxu1 %v3240_v10 }
  0x29   :  { %1516 = vmatprep.subr.bf16.mxu1 %v3241_v13 }
  0x2a   :  { %585 = vmatmul.mubr.bf16.vlgmr.msra.gmra.mrb[0].mxu0 %v3142_v21  ;;  %v3250_v21 = vld [vmem:[%s4587_s3 + $0x84] ss:$8 sps:$4 sm:$0xff]  }
  0x2b   :  { %2730 = vmatprep.mubr.msk.bf16.mxu0 %vm467_vm0, %v3145_v22  ;;  %v3252_v22 = vld [vmem:[%s4587_s3 + $0x80] ss:$8 sps:$4 sm:$0xff]  }
  0x2c   :  { %1517 = vmatpush1.bf16.msra.mxu1 %v3243_v14 }
  0x2d   :  { %1518 = vmatprep.subr.bf16.mxu1 %v3244_v15 }
  0x30   :  { %1519 = vmatpush1.bf16.msra.mxu1 %v3246_v16  ;;  %v3276_v16 = vld [vmem:[%s4587_s3 + $0x104] ss:$8 sps:$4 sm:$0xff]  }
  0x31   :  { %1520 = vmatprep.subr.bf16.mxu1 %v3247_v19 }
  0x32   :  { %595 = vmatmul.mubr.bf16.gmra.mrb[4].mxu0 %v3147_v23  ;;  %v3216_v23 = vld [vmem:[%s4586_s0 + $0x180] ss:$8 sps:$4 sm:$0xff]  }
  0x33   :  { %2731 = vmatprep.mubr.msk.bf16.mxu0 %vm467_vm0, %v3148_v24  ;;  %v3253_v24 = vld [vmem:[%s4587_s3 + $0x94] ss:$8 sps:$4 sm:$0xff]  }
  0x34   :  { %1521 = vmatpush1.bf16.msra.mxu1 %v3249_v20 }
  0x35   :  { %1522 = vmatprep.subr.bf16.mxu1 %v3250_v21 }
  0x38   :  { %1523 = vmatpush1.bf16.msra.mxu1 %v3252_v22 }
  0x39   :  { %1524 = vmatprep.subr.bf16.mxu1 %v3253_v24 }
  0x3a   :  { %605 = vmatmul.mubr.bf16.gmra.mrb[8].mxu0 %v3150_v25  ;;  %v3217_v25 = vld [vmem:[%s4586_s0 + $0x194] ss:$8 sps:$4 sm:$0xff]  }
  0x3b   :  { %2732 = vmatprep.mubr.msk.bf16.mxu0 %vm467_vm0, %v3151_v26  ;;  %v3255_v26 = vld [vmem:[%s4587_s3 + $0x90] ss:$8 sps:$4 sm:$0xff]  }
  0x3c   :  { %1525 = vmatpush1.bf16.msra.mxu1 %v3255_v26 }
  0x42   :  { %615 = vmatmul.mubr.bf16.gmra.mrb[12].mxu0 %v3153_v27  ;;  %v3256_v27 = vld [vmem:[%s4587_s3 + $0xa4] ss:$8 sps:$4 sm:$0xff]  }
  0x43   :  { %2733 = vmatprep.mubr.msk.bf16.mxu0 %vm467_vm0, %v3154_v28  ;;  %1526 = vmatprep.subr.bf16.mxu1 %v3256_v27  ;;  %v3258_v28 = vld [vmem:[%s4587_s3 + $0xa0] ss:$8 sps:$4 sm:$0xff]  }
  0x44   :  { %1527 = vmatpush1.bf16.msra.mxu1 %v3258_v28 }
  0x4a   :  { %625 = vmatmul.mubr.bf16.gmra.mrb[16].mxu0 %v3156_v29  ;;  %v3219_v29 = vld [vmem:[%s4586_s0 + $0x190] ss:$8 sps:$4 sm:$0xff]  }
  0x4b   :  { %2734 = vmatprep.mubr.msk.bf16.mxu0 %vm467_vm0, %v3157_v30  ;;  %v3259_v30 = vld [vmem:[%s4587_s3 + $0xb4] ss:$8 sps:$4 sm:$0xff]  }
  0x4c   :  { %1528 = vmatprep.subr.bf16.mxu1 %v3259_v30 }
  0x52   :  { %635 = vmatmul.mubr.bf16.gmra.mrb[20].mxu0 %v3159_v31  ;;  %v3220_v31 = vld [vmem:[%s4586_s0 + $0x1a4] ss:$8 sps:$4 sm:$0xff]  }
  0x53   :  { %2735 = vmatprep.mubr.msk.bf16.mxu0 %vm467_vm0, %v3160_v32  ;;  %v3261_v32 = vld [vmem:[%s4587_s3 + $0xb0] ss:$8 sps:$4 sm:$0xff]  }
  0x54   :  { %1529 = vmatpush1.bf16.msra.mxu1 %v3261_v32 }
  0x5a   :  { %645 = vmatmul.mubr.bf16.gmra.mrb[24].mxu0 %v3162_v33  ;;  %v3262_v33 = vld [vmem:[%s4587_s3 + $0xc4] ss:$8 sps:$4 sm:$0xff]  }
  0x5b   :  { %2736 = vmatprep.mubr.msk.bf16.mxu0 %vm467_vm0, %v3163_v34  ;;  %v3264_v34 = vld [vmem:[%s4587_s3 + $0xc0] ss:$8 sps:$4 sm:$0xff]   ;;  %1530 = vmatprep.subr.bf16.mxu1 %v3262_v33 }
  0x5c   :  { %1531 = vmatpush1.bf16.msra.mxu1 %v3264_v34 }
  0x62   :  { %655 = vmatmul.mubr.bf16.gmra.mrb[28].mxu0 %v3165_v35  ;;  %v3222_v35 = vld [vmem:[%s4586_s0 + $0x1a0] ss:$8 sps:$4 sm:$0xff]  }
  0x63   :  { %2737 = vmatprep.mubr.msk.bf16.mxu0 %vm467_vm0, %v3166_v36  ;;  %v3265_v36 = vld [vmem:[%s4587_s3 + $0xd4] ss:$8 sps:$4 sm:$0xff]  }
  0x64   :  { %1532 = vmatprep.subr.bf16.mxu1 %v3265_v36 }
  0x6a   :  { %665 = vmatmul.mubr.bf16.gmra.mrb[32].mxu0 %v3168_v37  ;;  %v3223_v37 = vld [vmem:[%s4586_s0 + $0x1b4] ss:$8 sps:$4 sm:$0xff]  }
  0x6b   :  { %2738 = vmatprep.mubr.msk.bf16.mxu0 %vm467_vm0, %v3169_v38  ;;  %v3267_v38 = vld [vmem:[%s4587_s3 + $0xd0] ss:$8 sps:$4 sm:$0xff]  }
  0x6c   :  { %1533 = vmatpush1.bf16.msra.mxu1 %v3267_v38 }
  0x72   :  { %675 = vmatmul.mubr.bf16.gmra.mrb[36].mxu0 %v3171_v39  ;;  %v3268_v39 = vld [vmem:[%s4587_s3 + $0xe4] ss:$8 sps:$4 sm:$0xff]  }
  0x73   :  { %2739 = vmatprep.mubr.msk.bf16.mxu0 %vm467_vm0, %v3172_v40  ;;  %v3270_v40 = vld [vmem:[%s4587_s3 + $0xe0] ss:$8 sps:$4 sm:$0xff]   ;;  %1534 = vmatprep.subr.bf16.mxu1 %v3268_v39 }
  0x74   :  { %1535 = vmatpush1.bf16.msra.mxu1 %v3270_v40  ;;  %v3991_v40 = vld [vmem:[%s4588_s2] ss:$0 sm:$0xff] }
  0x7a   :  { %685 = vmatmul.mubr.bf16.gmra.mrb[40].mxu0 %v3174_v41 }
  0x7b   :  { %2740 = vmatprep.mubr.msk.bf16.mxu0 %vm467_vm0, %v3175_v42 }
  0x82   :  { %695 = vmatmul.mubr.bf16.gmra.mrb[44].mxu0 %v3177_v43  ;;  %v3225_v43 = vld [vmem:[%s4586_s0 + $0x1b0] ss:$8 sps:$4 sm:$0xff]  }
  0x83   :  { %2741 = vmatprep.mubr.msk.bf16.mxu0 %vm467_vm0, %v3178_v44  ;;  %v3271_v44 = vld [vmem:[%s4587_s3 + $0xf4] ss:$8 sps:$4 sm:$0xff]  }
  0x84   :  { %1536 = vmatprep.subr.bf16.mxu1 %v3271_v44 }
  0x8a   :  { %705 = vmatmul.mubr.bf16.gmra.mrb[48].mxu0 %v3180_v45 }
  0x8b   :  { %2742 = vmatprep.mubr.msk.bf16.mxu0 %vm467_vm0, %v3181_v46 }
  0x92   :  { %715 = vmatmul.mubr.bf16.gmra.mrb[52].mxu0 %v3183_v47  ;;  %v3273_v47 = vld [vmem:[%s4587_s3 + $0xf0] ss:$8 sps:$4 sm:$0xff]  }
  0x93   :  { %2743 = vmatprep.mubr.msk.bf16.mxu0 %vm467_vm0, %v3184_v48  ;;  %1537 = vmatpush1.bf16.msra.mxu1 %v3273_v47 }
  0x94   :  { %1639 = vmatprep.subr.bf16.mxu1 %v3276_v16 }
  0x9a   :  { %725 = vmatmul.mubr.bf16.gmra.mrb[56].mxu0 %v3186_v49 }
  0x9b   :  { %2744 = vmatprep.mubr.msk.bf16.mxu0 %vm467_vm0, %v3187_v50 }
  0xa2   :  { %735 = vmatmul.mubr.bf16.gmra.mrb[60].mxu0 %v3189_v51 }
  0xa3   :  { %2745 = vmatprep.mubr.msk.bf16.mxu0 %vm467_vm0, %v3190_v52 }
  0xaa   :  { %745 = vmatmul.mubr.bf16.gmra.mrb[64].mxu0 %v3192_v53 }
  0xab   :  { %2746 = vmatprep.mubr.msk.bf16.mxu0 %vm467_vm0, %v3193_v54 }
  0xb2   :  { %755 = vmatmul.mubr.bf16.gmra.mrb[68].mxu0 %v3195_v55 }
  0xb3   :  { %2747 = vmatprep.mubr.msk.bf16.mxu0 %vm467_vm0, %v3196_v56 }
  0xba   :  { %765 = vmatmul.mubr.bf16.gmra.mrb[72].mxu0 %v3198_v57 }
  0xbb   :  { %2748 = vmatprep.mubr.msk.bf16.mxu0 %vm467_vm0, %v3199_v58 }
  0xc2   :  { %775 = vmatmul.mubr.bf16.gmra.mrb[76].mxu0 %v3201_v59 }
  0xc3   :  { %2749 = vmatprep.mubr.msk.bf16.mxu0 %vm467_vm0, %v3202_v60 }
  0xca   :  { %785 = vmatmul.mubr.bf16.gmra.mrb[80].mxu0 %v3204_v63 }
  0xcb   :  { %2750 = vmatprep.mubr.msk.bf16.mxu0 %vm467_vm0, %v3205_v0 }
  0xd2   :  { %795 = vmatmul.mubr.bf16.gmra.mrb[84].mxu0 %v3207_v5 }
  0xd3   :  { %2751 = vmatprep.mubr.msk.bf16.mxu0 %vm467_vm0, %v3208_v6 }
  0xda   :  { %805 = vmatmul.mubr.bf16.gmra.mrb[88].mxu0 %v3210_v11 }
  0xdb   :  { %2752 = vmatprep.mubr.msk.bf16.mxu0 %vm467_vm0, %v3211_v12 }
  0xe2   :  { %815 = vmatmul.mubr.bf16.gmra.mrb[92].mxu0 %v3213_v17 }
  0xe3   :  { %2753 = vmatprep.mubr.msk.bf16.mxu0 %vm467_vm0, %v3214_v18 }
  0xea   :  { %825 = vmatmul.mubr.bf16.gmra.mrb[96].mxu0 %v3216_v23 }
  0xeb   :  { %2754 = vmatprep.mubr.msk.bf16.mxu0 %vm467_vm0, %v3217_v25 }
  0xf2   :  { %835 = vmatmul.mubr.bf16.gmra.mrb[100].mxu0 %v3219_v29 }
  0xf3   :  { %2755 = vmatprep.mubr.msk.bf16.mxu0 %vm467_vm0, %v3220_v31 }
  0xfa   :  { %845 = vmatmul.mubr.bf16.gmra.mrb[104].mxu0 %v3222_v35 }
  0xfb   :  { %2756 = vmatprep.mubr.msk.bf16.mxu0 %vm467_vm0, %v3223_v37 }
  0xfd   :  { %v3808_v41 = vpop.f32.mrb[0].mxu0 }
  0xfe   :  { %v3810_v42 = vpop.f32.mrb[1].mxu0 }
  0xff   :  { %v3820_v46 = vpop.f32.mrb[2].mxu0  ;;  %v4617_v47 = vmax.f32 %v3808_v41, %v3810_v42 }
 0x100   :  { %v3825_v48 = vpop.f32.mrb[3].mxu0 }
 0x101   :  { %v4618_v37 = vmax.f32 %v3820_v46, %v3825_v48 }
 0x102   :  { %855 = vmatmul.mubr.bf16.gmra.mrb[108].mxu0 %v3225_v43 }
 0x105   :  { %v3829_v50 = vpop.f32.mrb[4].mxu0 }
 0x106   :  { %v3831_v51 = vpop.f32.mrb[5].mxu0 }
 0x107   :  { %v3835_v53 = vpop.f32.mrb[6].mxu0  ;;  %v4619_v41 = vmax.f32 %v3829_v50, %v3831_v51 }
 0x108   :  { %v3837_v54 = vpop.f32.mrb[7].mxu0 }
 0x10d   :  { %v3841_v56 = vpop.f32.mrb[8].mxu0 }
 0x10e   :  { %v3843_v57 = vpop.f32.mrb[9].mxu0 }
 0x10f   :  { %v3847_v59 = vpop.f32.mrb[10].mxu0  ;;  %v4621_v50 = vmax.f32 %v3841_v56, %v3843_v57 }
 0x110   :  { %v3849_v60 = vpop.f32.mrb[11].mxu0 }
 0x115   :  { %v3853_v62 = vpop.f32.mrb[12].mxu0 }
 0x116   :  { %v3855_v63 = vpop.f32.mrb[13].mxu0 }
 0x117   :  { %v3859_v1 = vpop.f32.mrb[14].mxu0 }
 0x118   :  { %v3861_v2 = vpop.f32.mrb[15].mxu0 }
 0x11d   :  { %v3865_v4 = vpop.f32.mrb[16].mxu0 }
 0x11e   :  { %v3867_v5 = vpop.f32.mrb[17].mxu0 }
 0x11f   :  { %v3871_v7 = vpop.f32.mrb[18].mxu0 }
 0x120   :  { %v3873_v8 = vpop.f32.mrb[19].mxu0 }
 0x125   :  { %v3877_v10 = vpop.f32.mrb[20].mxu0 }
 0x126   :  { %v3879_v11 = vpop.f32.mrb[21].mxu0 }
 0x127   :  { %v3883_v13 = vpop.f32.mrb[22].mxu0 }
 0x128   :  { %v3885_v14 = vpop.f32.mrb[23].mxu0 }
 0x12d   :  { %v3892_v17 = vpop.f32.mrb[24].mxu0 }
 0x12e   :  { %v3894_v18 = vpop.f32.mrb[25].mxu0 }
 0x12f   :  { %v3898_v20 = vpop.f32.mrb[26].mxu0 }
 0x130   :  { %v3900_v21 = vpop.f32.mrb[27].mxu0 }
 0x135   :  { %v3904_v23 = vpop.f32.mrb[28].mxu0 }
 0x136   :  { %v3906_v24 = vpop.f32.mrb[29].mxu0 }
 0x137   :  { %v3910_v26 = vpop.f32.mrb[30].mxu0 }
 0x138   :  { %v3912_v27 = vpop.f32.mrb[31].mxu0 }
 0x13d   :  { %v3916_v29 = vpop.f32.mrb[32].mxu0 }
 0x13e   :  { %v3918_v30 = vpop.f32.mrb[33].mxu0 }
 0x13f   :  { %v3922_v32 = vpop.f32.mrb[34].mxu0 }
 0x140   :  { %v3924_v33 = vpop.f32.mrb[35].mxu0 }
 0x145   :  { %v3928_v35 = vpop.f32.mrb[36].mxu0 }
 0x146   :  { %v3930_v36 = vpop.f32.mrb[37].mxu0 }
 0x147   :  { %v3934_v38 = vpop.f32.mrb[38].mxu0 }
 0x148   :  { %v3936_v39 = vpop.f32.mrb[39].mxu0 }
 0x14d   :  { %v3940_v43 = vpop.f32.mrb[40].mxu0 }
 0x14e   :  { %v3942_v44 = vpop.f32.mrb[41].mxu0 }
 0x14f   :  { %v3946_v16 = vpop.f32.mrb[42].mxu0 }
 0x150   :  { %v3948_v34 = vpop.f32.mrb[43].mxu0 }
 0x155   :  { %v3952_v31 = vpop.f32.mrb[44].mxu0 }
 0x156   :  { %v3954_v28 = vpop.f32.mrb[45].mxu0 }
 0x157   :  { %v3958_v25 = vpop.f32.mrb[46].mxu0 }
 0x158   :  { %4607 = vst [vmem:[#allocation2_spill] sm:$0xff] %v3958_v25  ;;  %v3960_v22 = vpop.f32.mrb[47].mxu0 }
 0x159   :  { %4608 = vst [vmem:[#allocation3_spill] sm:$0xff] %v3960_v22 }
 0x15d   :  { %v3964_v19 = vpop.f32.mrb[48].mxu0 }
 0x15e   :  { %4609 = vst [vmem:[#allocation4_spill] sm:$0xff] %v3964_v19  ;;  %v3966_v15 = vpop.f32.mrb[49].mxu0 }
 0x15f   :  { %4610 = vst [vmem:[#allocation5_spill] sm:$0xff] %v3966_v15  ;;  %v3970_v12 = vpop.f32.mrb[50].mxu0 }
 0x160   :  { %4611 = vst [vmem:[#allocation6_spill] sm:$0xff] %v3970_v12  ;;  %v3972_v9 = vpop.f32.mrb[51].mxu0 }
 0x161   :  { %4612 = vst [vmem:[#allocation7_spill] sm:$0xff] %v3972_v9 }
 0x165   :  { %v3976_v6 = vpop.f32.mrb[52].mxu0 }
 0x166   :  { %4613 = vst [vmem:[#allocation8_spill] sm:$0xff] %v3976_v6  ;;  %v3978_v3 = vpop.f32.mrb[53].mxu0 }
 0x167   :  { %4614 = vst [vmem:[#allocation9_spill] sm:$0xff] %v3978_v3  ;;  %v3982_v0 = vpop.f32.mrb[54].mxu0 }
 0x168   :  { %4615 = vst [vmem:[#allocation10_spill] sm:$0xff] %v3982_v0  ;;  %v3984_v61 = vpop.f32.mrb[55].mxu0 }
 0x169   :  { %4616 = vst [vmem:[#allocation11_spill] sm:$0xff] %v3984_v61 }
 0x16d   :  { %v726_v58 = vpop.f32.mrb[56].mxu0 }
 0x16e   :  { %v728_v55 = vpop.f32.mrb[57].mxu0 }
 0x16f   :  { %v893_v52 = vmax.f32 %v726_v58, %v728_v55  ;;  %v730_v49 = vpop.f32.mrb[58].mxu0 }
 0x170   :  { %v732_v45 = vpop.f32.mrb[59].mxu0 }
 0x171   :  { %v921_v3 = vmax.f32 %v4617_v47, %v893_v52  ;;  %v894_v6 = vmax.f32 %v730_v49, %v732_v45  ;;  %v4620_v52 = vmax.f32 %v3835_v53, %v3837_v54  ;;  %v3274_v53 = vld [vmem:[%s4587_s3 + $0x100] ss:$8 sps:$4 sm:$0xff]   ;;  %v3279_v54 = vld [vmem:[%s4587_s3 + $0x114] ss:$8 sps:$4 sm:$0xff]  }
 0x173   :  { %v956_v9 = vadd.f32 %v3991_v40, %v921_v3  ;;  %v922_v61 = vmax.f32 %v4618_v37, %v894_v6 }
 0x175   :  { %v957_v55 = vadd.f32 %v3991_v40, %v922_v61  ;;  %v736_v58 = vpop.f32.mrb[60].mxu0  ;;  %v984_v12 = vmax.f32 %v956_v9, 0.0 }
 0x176   :  { %v738_v0 = vpop.f32.mrb[61].mxu0 }
 0x177   :  { %v985_v15 = vmax.f32 %v957_v55, 0.0  ;;  %v895_v19 = vmax.f32 %v736_v58, %v738_v0  ;;  %v740_v22 = vpop.f32.mrb[62].mxu0  ;;  %v3277_v58 = vld [vmem:[%s4587_s3 + $0x110] ss:$8 sps:$4 sm:$0xff]  }
 0x178   :  { %v742_v25 = vpop.f32.mrb[63].mxu0 }
 0x179   :  { %v923_v42 = vmax.f32 %v4619_v41, %v895_v19  ;;  %v896_v45 = vmax.f32 %v740_v22, %v742_v25  ;;  %v1012_v49 = vpack.c.bf16 %v985_v15, %v984_v12  ;;  %v4622_v22 = vmax.f32 %v3847_v59, %v3849_v60 }
 0x17b   :  { %v924_v46 = vmax.f32 %v4620_v52, %v896_v45  ;;  %v958_v48 = vadd.f32 %v3991_v40, %v923_v42  ;;  %v3282_v42 = vld [vmem:[%s4587_s3 + $0x124] ss:$8 sps:$4 sm:$0xff]  }
 0x17d   :  { %v746_v61 = vpop.f32.mrb[64].mxu0  ;;  %v959_v3 = vadd.f32 %v3991_v40, %v924_v46  ;;  %v986_v37 = vmax.f32 %v958_v48, 0.0 }
 0x17e   :  { %v748_v6 = vpop.f32.mrb[65].mxu0 }
 0x17f   :  { %v897_v9 = vmax.f32 %v746_v61, %v748_v6  ;;  %v750_v0 = vpop.f32.mrb[66].mxu0  ;;  %v987_v47 = vmax.f32 %v959_v3, 0.0  ;;  %v3280_v6 = vld [vmem:[%s4587_s3 + $0x120] ss:$8 sps:$4 sm:$0xff]  }
 0x180   :  { %v752_v55 = vpop.f32.mrb[67].mxu0 }
 0x181   :  { %v925_v51 = vmax.f32 %v4621_v50, %v897_v9  ;;  %v898_v12 = vmax.f32 %v750_v0, %v752_v55  ;;  %v4012_v15 = vpack.c.bf16 %v987_v47, %v986_v37  ;;  %v3285_v9 = vld [vmem:[%s4587_s3 + $0x134] ss:$8 sps:$4 sm:$0xff]   ;;  %v4624_v37 = vmax.f32 %v3859_v1, %v3861_v2  ;;  %v3283_v55 = vld [vmem:[%s4587_s3 + $0x130] ss:$8 sps:$4 sm:$0xff]  }
 0x183   :  { %v960_v19 = vadd.f32 %v3991_v40, %v925_v51  ;;  %v926_v25 = vmax.f32 %v4622_v22, %v898_v12  ;;  %1538 = vmatprep.mubr.bf16.mxu1 %v4012_v15  ;;  %v3288_v51 = vld [vmem:[%s4587_s3 + $0x144] ss:$8 sps:$4 sm:$0xff]   ;;  %v4625_v22 = vmax.f32 %v3865_v4, %v3867_v5 }
 0x184   :  { %1539 = vmatmul.mubr.bf16.vlgmr.msra.gmra.mrb[0].mxu1 %v1012_v49  ;;  %v4623_v49 = vmax.f32 %v3853_v62, %v3855_v63 }
 0x185   :  { %v961_v56 = vadd.f32 %v3991_v40, %v926_v25  ;;  %v756_v57 = vpop.f32.mrb[68].mxu0  ;;  %1640 = vmatpush1.bf16.msra.mxu1 %v3274_v53  ;;  %v988_v45 = vmax.f32 %v960_v19, 0.0 }
 0x186   :  { %v758_v41 = vpop.f32.mrb[69].mxu0  ;;  %1641 = vmatprep.subr.bf16.mxu1 %v3279_v54 }
 0x187   :  { %v989_v59 = vmax.f32 %v961_v56, 0.0  ;;  %v899_v60 = vmax.f32 %v756_v57, %v758_v41  ;;  %v760_v52 = vpop.f32.mrb[70].mxu0  ;;  %v3286_v57 = vld [vmem:[%s4587_s3 + $0x140] ss:$8 sps:$4 sm:$0xff]  }
 0x188   :  { %v762_v46 = vpop.f32.mrb[71].mxu0 }
 0x189   :  { %v927_v48 = vmax.f32 %v4623_v49, %v899_v60  ;;  %v900_v61 = vmax.f32 %v760_v52, %v762_v46  ;;  %v4035_v3 = vpack.c.bf16 %v989_v59, %v988_v45  ;;  %1642 = vmatpush1.bf16.msra.mxu1 %v3277_v58  ;;  %v3291_v58 = vld [vmem:[%s4587_s3 + $0x154] ss:$8 sps:$4 sm:$0xff]   ;;  %v3289_v59 = vld [vmem:[%s4587_s3 + $0x150] ss:$8 sps:$4 sm:$0xff]   ;;  %v3294_v52 = vld [vmem:[%s4587_s3 + $0x164] ss:$8 sps:$4 sm:$0xff]  }
 0x18a   :  { %1643 = vmatprep.subr.bf16.mxu1 %v3282_v42  ;;  %v4626_v42 = vmax.f32 %v3871_v7, %v3873_v8 }
 0x18b   :  { %v962_v0 = vadd.f32 %v3991_v40, %v927_v48  ;;  %v928_v62 = vmax.f32 %v4624_v37, %v900_v61  ;;  %v3292_v37 = vld [vmem:[%s4587_s3 + $0x160] ss:$8 sps:$4 sm:$0xff]  }
 0x18d   :  { %v963_v63 = vadd.f32 %v3991_v40, %v928_v62  ;;  %v766_v47 = vpop.f32.mrb[72].mxu0  ;;  %1644 = vmatpush1.bf16.msra.mxu1 %v3280_v6  ;;  %v990_v12 = vmax.f32 %v962_v0, 0.0  ;;  %v4627_v6 = vmax.f32 %v3877_v10, %v3879_v11  ;;  %v3297_v62 = vld [vmem:[%s4587_s3 + $0x174] ss:$8 sps:$4 sm:$0xff]  }
 0x18e   :  { %v768_v50 = vpop.f32.mrb[73].mxu0  ;;  %1645 = vmatprep.subr.bf16.mxu1 %v3285_v9 }
 0x18f   :  { %v991_v53 = vmax.f32 %v963_v63, 0.0  ;;  %v901_v54 = vmax.f32 %v766_v47, %v768_v50  ;;  %v770_v19 = vpop.f32.mrb[74].mxu0  ;;  %v4628_v47 = vmax.f32 %v3883_v13, %v3885_v14  ;;  %v3295_v50 = vld [vmem:[%s4587_s3 + $0x170] ss:$8 sps:$4 sm:$0xff]  }
 0x190   :  { %v772_v1 = vpop.f32.mrb[75].mxu0 }
 0x191   :  { %v4054_v2 = vpack.c.bf16 %v991_v53, %v990_v12  ;;  %v929_v25 = vmax.f32 %v4625_v22, %v901_v54  ;;  %v902_v56 = vmax.f32 %v770_v19, %v772_v1  ;;  %1646 = vmatpush1.bf16.msra.mxu1 %v3283_v55  ;;  %v3300_v12 = vld [vmem:[%s4587_s3 + $0x184] ss:$8 sps:$4 sm:$0xff]   ;;  %v4629_v22 = vmax.f32 %v3892_v17, %v3894_v18 }
 0x192   :  { %1647 = vmatprep.subr.bf16.mxu1 %v3288_v51 }
 0x193   :  { %v964_v41 = vadd.f32 %v3991_v40, %v929_v25  ;;  %v930_v45 = vmax.f32 %v4626_v42, %v902_v56  ;;  %1548 = vmatprep.mubr.bf16.mxu1 %v4054_v2  ;;  %v4630_v42 = vmax.f32 %v3898_v20, %v3900_v21 }
 0x194   :  { %1549 = vmatmul.mubr.bf16.gmra.mrb[4].mxu1 %v4035_v3 }
 0x195   :  { %v965_v4 = vadd.f32 %v3991_v40, %v930_v45  ;;  %v776_v5 = vpop.f32.mrb[76].mxu0  ;;  %1648 = vmatpush1.bf16.msra.mxu1 %v3286_v57  ;;  %v992_v7 = vmax.f32 %v964_v41, 0.0  ;;  %v3298_v57 = vld [vmem:[%s4587_s3 + $0x180] ss:$8 sps:$4 sm:$0xff]  }
 0x196   :  { %v778_v60 = vpop.f32.mrb[77].mxu0  ;;  %1649 = vmatprep.subr.bf16.mxu1 %v3291_v58  ;;  %v3303_v58 = vld [vmem:[%s4587_s3 + $0x194] ss:$8 sps:$4 sm:$0xff]  }
 0x197   :  { %v993_v8 = vmax.f32 %v965_v4, 0.0  ;;  %v903_v46 = vmax.f32 %v776_v5, %v778_v60  ;;  %v780_v49 = vpop.f32.mrb[78].mxu0  ;;  %v3301_v4 = vld [vmem:[%s4587_s3 + $0x190] ss:$8 sps:$4 sm:$0xff]  }
 0x198   :  { %v782_v48 = vpop.f32.mrb[79].mxu0 }
 0x199   :  { %v4078_v61 = vpack.c.bf16 %v993_v8, %v992_v7  ;;  %v931_v9 = vmax.f32 %v4627_v6, %v903_v46  ;;  %v904_v0 = vmax.f32 %v780_v49, %v782_v48  ;;  %1650 = vmatpush1.bf16.msra.mxu1 %v3289_v59  ;;  %v3306_v59 = vld [vmem:[%s4587_s3 + $0x1a4] ss:$8 sps:$4 sm:$0xff]   ;;  %v4631_v46 = vmax.f32 %v3904_v23, %v3906_v24  ;;  %v3304_v6 = vld [vmem:[%s4587_s3 + $0x1a0] ss:$8 sps:$4 sm:$0xff]  }
 0x19a   :  { %1651 = vmatprep.subr.bf16.mxu1 %v3294_v52 }
 0x19b   :  { %v966_v63 = vadd.f32 %v3991_v40, %v931_v9  ;;  %v932_v55 = vmax.f32 %v4628_v47, %v904_v0  ;;  %v3309_v9 = vld [vmem:[%s4587_s3 + $0x1b4] ss:$8 sps:$4 sm:$0xff]  }
 0x19d   :  { %v967_v10 = vadd.f32 %v3991_v40, %v932_v55  ;;  %v786_v11 = vpop.f32.mrb[80].mxu0  ;;  %1652 = vmatpush1.bf16.msra.mxu1 %v3292_v37  ;;  %v994_v53 = vmax.f32 %v966_v63, 0.0  ;;  %v4632_v37 = vmax.f32 %v3910_v26, %v3912_v27  ;;  %v3307_v63 = vld [vmem:[%s4587_s3 + $0x1b0] ss:$8 sps:$4 sm:$0xff]   ;;  %v3312_v55 = vld [vmem:[%s4587_s3 + $0x1c4] ss:$8 sps:$4 sm:$0xff]  }
 0x19e   :  { %v788_v51 = vpop.f32.mrb[81].mxu0  ;;  %1653 = vmatprep.subr.bf16.mxu1 %v3297_v62 }
 0x19f   :  { %v995_v54 = vmax.f32 %v967_v10, 0.0  ;;  %v905_v19 = vmax.f32 %v786_v11, %v788_v51  ;;  %v790_v1 = vpop.f32.mrb[82].mxu0 }
 0x1a0   :  { %v792_v13 = vpop.f32.mrb[83].mxu0 }
 0x1a1   :  { %v4100_v14 = vpack.c.bf16 %v995_v54, %v994_v53  ;;  %v933_v25 = vmax.f32 %v4629_v22, %v905_v19  ;;  %v906_v56 = vmax.f32 %v790_v1, %v792_v13  ;;  %1654 = vmatpush1.bf16.msra.mxu1 %v3295_v50  ;;  %v3310_v19 = vld [vmem:[%s4587_s3 + $0x1c0] ss:$8 sps:$4 sm:$0xff]   ;;  %v3315_v1 = vld [vmem:[%s4587_s3 + $0x1d4] ss:$8 sps:$4 sm:$0xff]   ;;  %v4634_v22 = vmax.f32 %v3922_v32, %v3924_v33 }
 0x1a2   :  { %1655 = vmatprep.subr.bf16.mxu1 %v3300_v12  ;;  %v4633_v12 = vmax.f32 %v3916_v29, %v3918_v30 }
 0x1a3   :  { %v968_v41 = vadd.f32 %v3991_v40, %v933_v25  ;;  %v934_v45 = vmax.f32 %v4630_v42, %v906_v56  ;;  %1558 = vmatprep.mubr.bf16.mxu1 %v4100_v14  ;;  %v3313_v56 = vld [vmem:[%s4587_s3 + $0x1d0] ss:$8 sps:$4 sm:$0xff]  }
 0x1a4   :  { %1559 = vmatmul.mubr.bf16.gmra.mrb[8].mxu1 %v4078_v61 }
 0x1a5   :  { %v969_v17 = vadd.f32 %v3991_v40, %v934_v45  ;;  %v796_v18 = vpop.f32.mrb[84].mxu0  ;;  %1656 = vmatpush1.bf16.msra.mxu1 %v3298_v57  ;;  %v996_v20 = vmax.f32 %v968_v41, 0.0 }
 0x1a6   :  { %v798_v5 = vpop.f32.mrb[85].mxu0  ;;  %1657 = vmatprep.subr.bf16.mxu1 %v3303_v58  ;;  %v3318_v58 = vld [vmem:[%s4587_s3 + $0x1e4] ss:$8 sps:$4 sm:$0xff]  }
 0x1a7   :  { %v997_v21 = vmax.f32 %v969_v17, 0.0  ;;  %v907_v60 = vmax.f32 %v796_v18, %v798_v5  ;;  %v800_v52 = vpop.f32.mrb[86].mxu0  ;;  %v4635_v18 = vmax.f32 %v3928_v35, %v3930_v36 }
 0x1a8   :  { %v802_v7 = vpop.f32.mrb[87].mxu0 }
 0x1a9   :  { %v4124_v8 = vpack.c.bf16 %v997_v21, %v996_v20  ;;  %v935_v49 = vmax.f32 %v4631_v46, %v907_v60  ;;  %v908_v48 = vmax.f32 %v800_v52, %v802_v7  ;;  %1658 = vmatpush1.bf16.msra.mxu1 %v3301_v4  ;;  %v3321_v20 = vld [vmem:[%s4587_s3 + $0x1f4] ss:$8 sps:$4 sm:$0xff]   ;;  %v4636_v60 = vmax.f32 %v3934_v38, %v3936_v39  ;;  %v3319_v7 = vld [vmem:[%s4587_s3 + $0x1f0] ss:$8 sps:$4 sm:$0xff]  }
 0x1aa   :  { %1659 = vmatprep.subr.bf16.mxu1 %v3306_v59  ;;  %v3316_v59 = vld [vmem:[%s4587_s3 + $0x1e0] ss:$8 sps:$4 sm:$0xff]  }
 0x1ab   :  { %v970_v0 = vadd.f32 %v3991_v40, %v935_v49  ;;  %v936_v62 = vmax.f32 %v4632_v37, %v908_v48  ;;  %v3324_v49 = vld [vmem:[%s4587_s3 + $0x204] ss:$8 sps:$4 sm:$0xff]   ;;  %v4637_v37 = vmax.f32 %v3940_v43, %v3942_v44 }
 0x1ad   :  { %v971_v23 = vadd.f32 %v3991_v40, %v936_v62  ;;  %v806_v24 = vpop.f32.mrb[88].mxu0  ;;  %1660 = vmatpush1.bf16.msra.mxu1 %v3304_v6  ;;  %v998_v10 = vmax.f32 %v970_v0, 0.0 }
 0x1ae   :  { %v808_v47 = vpop.f32.mrb[89].mxu0  ;;  %1661 = vmatprep.subr.bf16.mxu1 %v3309_v9 }
 0x1af   :  { %v999_v11 = vmax.f32 %v971_v23, 0.0  ;;  %v909_v50 = vmax.f32 %v806_v24, %v808_v47  ;;  %v810_v51 = vpop.f32.mrb[90].mxu0 }
 0x1b0   :  { %v812_v26 = vpop.f32.mrb[91].mxu0 }
 0x1b1   :  { %v4146_v27 = vpack.c.bf16 %v999_v11, %v998_v10  ;;  %v937_v53 = vmax.f32 %v4633_v12, %v909_v50  ;;  %v910_v54 = vmax.f32 %v810_v51, %v812_v26  ;;  %1662 = vmatpush1.bf16.msra.mxu1 %v3307_v63  ;;  %v4638_v63 = vmax.f32 %v3946_v16, %v3948_v34 }
 0x1b2   :  { %1663 = vmatprep.subr.bf16.mxu1 %v3312_v55  ;;  %v4639_v34 = vmax.f32 %v3952_v31, %v3954_v28 }
 0x1b3   :  { %v972_v13 = vadd.f32 %v3991_v40, %v937_v53  ;;  %v938_v25 = vmax.f32 %v4634_v22, %v910_v54  ;;  %1568 = vmatprep.mubr.bf16.mxu1 %v4146_v27 }
 0x1b4   :  { %1569 = vmatmul.mubr.bf16.gmra.mrb[12].mxu1 %v4124_v8 }
 0x1b5   :  { %v973_v29 = vadd.f32 %v3991_v40, %v938_v25  ;;  %v816_v30 = vpop.f32.mrb[92].mxu0  ;;  %1664 = vmatpush1.bf16.msra.mxu1 %v3310_v19  ;;  %v1000_v32 = vmax.f32 %v972_v13, 0.0  ;;  %v4640_v19 = vld [vmem:[#allocation2_spill] sm:$0xff] }
 0x1b6   :  { %v818_v57 = vpop.f32.mrb[93].mxu0  ;;  %1665 = vmatprep.subr.bf16.mxu1 %v3315_v1  ;;  %v4641_v1 = vld [vmem:[#allocation3_spill] sm:$0xff] }
 0x1b7   :  { %v1001_v33 = vmax.f32 %v973_v29, 0.0  ;;  %v911_v41 = vmax.f32 %v816_v30, %v818_v57  ;;  %v820_v42 = vpop.f32.mrb[94].mxu0  ;;  %v4642_v13 = vmax.f32 %v4640_v19, %v4641_v1  ;;  %v3334_v19 = vld [vmem:[%s4587_s3 + $0x240] ss:$8 sps:$4 sm:$0xff]   ;;  %v3339_v1 = vld [vmem:[%s4587_s3 + $0x254] ss:$8 sps:$4 sm:$0xff]  }
 0x1b8   :  { %v822_v45 = vpop.f32.mrb[95].mxu0 }
 0x1b9   :  { %v4170_v17 = vpack.c.bf16 %v1001_v33, %v1000_v32  ;;  %v939_v4 = vmax.f32 %v4635_v18, %v911_v41  ;;  %v912_v5 = vmax.f32 %v820_v42, %v822_v45  ;;  %1666 = vmatpush1.bf16.msra.mxu1 %v3313_v56  ;;  %v4643_v32 = vld [vmem:[#allocation4_spill] sm:$0xff]  ;;  %v4644_v33 = vld [vmem:[#allocation5_spill] sm:$0xff] }
 0x1ba   :  { %1667 = vmatprep.subr.bf16.mxu1 %v3318_v58  ;;  %v4645_v41 = vmax.f32 %v4643_v32, %v4644_v33  ;;  %v3353_v32 = vld [vmem:[%s4589_s5 + $0x18] sm:$0xff]   ;;  %v3354_v33 = vld [vmem:[%s4589_s5 + $0x60] sm:$0xff]  }
 0x1bb   :  { %v974_v21 = vadd.f32 %v3991_v40, %v939_v4  ;;  %v940_v52 = vmax.f32 %v4636_v60, %v912_v5  ;;  %v4646_v4 = vld [vmem:[#allocation6_spill] sm:$0xff]  ;;  %v4647_v5 = vld [vmem:[#allocation7_spill] sm:$0xff] }
 0x1bd   :  { %v975_v35 = vadd.f32 %v3991_v40, %v940_v52  ;;  %v826_v36 = vpop.f32.mrb[96].mxu0  ;;  %1668 = vmatpush1.bf16.msra.mxu1 %v3316_v59  ;;  %v1002_v48 = vmax.f32 %v974_v21, 0.0  ;;  %v4648_v59 = vmax.f32 %v4646_v4, %v4647_v5  ;;  %v3367_v4 = vld [vmem:[%s4589_s5 + $0xc0] sm:$0xff]  }
 0x1be   :  { %v828_v46 = vpop.f32.mrb[97].mxu0  ;;  %1669 = vmatprep.subr.bf16.mxu1 %v3321_v20  ;;  %v3366_v5 = vld [vmem:[%s4589_s5 + $0x120] sm:$0xff]  }
 0x1bf   :  { %v1003_v6 = vmax.f32 %v975_v35, 0.0  ;;  %v913_v9 = vmax.f32 %v826_v36, %v828_v46  ;;  %v830_v0 = vpop.f32.mrb[98].mxu0 }
 0x1c0   :  { %v832_v38 = vpop.f32.mrb[99].mxu0 }
 0x1c1   :  { %v4192_v39 = vpack.c.bf16 %v1003_v6, %v1002_v48  ;;  %v941_v62 = vmax.f32 %v4637_v37, %v913_v9  ;;  %v914_v23 = vmax.f32 %v830_v0, %v832_v38  ;;  %1670 = vmatpush1.bf16.msra.mxu1 %v3319_v7  ;;  %v4649_v48 = vld [vmem:[#allocation8_spill] sm:$0xff]  ;;  %v4650_v6 = vld [vmem:[#allocation9_spill] sm:$0xff] }
 0x1c2   :  { %1772 = vmatprep.subr.bf16.mxu1 %v3324_v49  ;;  %v4651_v9 = vmax.f32 %v4649_v48, %v4650_v6 }
 0x1c3   :  { %v976_v24 = vadd.f32 %v3991_v40, %v941_v62  ;;  %v942_v47 = vmax.f32 %v4638_v63, %v914_v23  ;;  %1578 = vmatprep.mubr.bf16.mxu1 %v4192_v39  ;;  %v4652_v23 = vld [vmem:[#allocation10_spill] sm:$0xff] }
 0x1c4   :  { %1579 = vmatmul.mubr.bf16.gmra.mrb[16].mxu1 %v4170_v17 }
 0x1c5   :  { %v977_v55 = vadd.f32 %v3991_v40, %v942_v47  ;;  %v836_v10 = vpop.f32.mrb[100].mxu0  ;;  %1588 = vmatprep.mubr.bf16.mxu1 %v4035_v3  ;;  %v1004_v44 = vmax.f32 %v976_v24, 0.0  ;;  %v4653_v24 = vld [vmem:[#allocation11_spill] sm:$0xff] }
 0x1c6   :  { %v838_v43 = vpop.f32.mrb[101].mxu0  ;;  %v4654_v63 = vmax.f32 %v4652_v23, %v4653_v24 }
 0x1c7   :  { %v1005_v11 = vmax.f32 %v977_v55, 0.0  ;;  %v915_v50 = vmax.f32 %v836_v10, %v838_v43  ;;  %v840_v51 = vpop.f32.mrb[102].mxu0 }
 0x1c8   :  { %v842_v26 = vpop.f32.mrb[103].mxu0 }
 0x1c9   :  { %v4205_v12 = vpack.c.bf16 %v1005_v11, %v1004_v44  ;;  %v943_v16 = vmax.f32 %v4639_v34, %v915_v50  ;;  %v916_v53 = vmax.f32 %v840_v51, %v842_v26  ;;  %v3322_v11 = vld [vmem:[%s4587_s3 + $0x200] ss:$8 sps:$4 sm:$0xff]   ;;  %v3325_v50 = vld [vmem:[%s4587_s3 + $0x210] ss:$8 sps:$4 sm:$0xff]   ;;  %v3330_v51 = vld [vmem:[%s4587_s3 + $0x224] ss:$8 sps:$4 sm:$0xff]  }
 0x1ca   :  { %v3346_v26 = vld [vmem:[%s4589_s5 + $0x40] sm:$0xff]  }
 0x1cb   :  { %v978_v54 = vadd.f32 %v3991_v40, %v943_v16  ;;  %v944_v22 = vmax.f32 %v4642_v13, %v916_v53  ;;  %v3328_v34 = vld [vmem:[%s4587_s3 + $0x220] ss:$8 sps:$4 sm:$0xff]   ;;  %2898 = vmatprep.subr.bf16.mxu0 %v3346_v26  ;;  %v3333_v16 = vld [vmem:[%s4587_s3 + $0x234] ss:$8 sps:$4 sm:$0xff]   ;;  %v3331_v53 = vld [vmem:[%s4587_s3 + $0x230] ss:$8 sps:$4 sm:$0xff]  }
 0x1cc   :  { %1589 = vmatmul.mubr.bf16.gmra.mrb[20].mxu1 %v4012_v15  ;;  %v3337_v13 = vld [vmem:[%s4587_s3 + $0x250] ss:$8 sps:$4 sm:$0xff]  }
 0x1cd   :  { %v979_v25 = vadd.f32 %v3991_v40, %v944_v22  ;;  %v846_v29 = vpop.f32.mrb[104].mxu0  ;;  %1598 = vmatprep.mubr.bf16.mxu1 %v4078_v61  ;;  %v1006_v56 = vmax.f32 %v978_v54, 0.0  ;;  %v3336_v54 = vld [vmem:[%s4587_s3 + $0x244] ss:$8 sps:$4 sm:$0xff]  }
 0x1ce   :  { %v848_v30 = vpop.f32.mrb[105].mxu0  ;;  %v3342_v22 = vld [vmem:[%s4587_s3 + $0x264] ss:$8 sps:$4 sm:$0xff]  }
 0x1cf   :  { %v1007_v57 = vmax.f32 %v979_v25, 0.0  ;;  %v917_v58 = vmax.f32 %v846_v29, %v848_v30  ;;  %v850_v28 = vpop.f32.mrb[106].mxu0  ;;  %v3340_v25 = vld [vmem:[%s4587_s3 + $0x260] ss:$8 sps:$4 sm:$0xff]   ;;  %v3345_v29 = vld [vmem:[%s4587_s3 + $0x274] ss:$8 sps:$4 sm:$0xff]  }
 0x1d0   :  { %v852_v31 = vpop.f32.mrb[107].mxu0  ;;  %v3348_v30 = vld [vmem:[%s4589_s5 + $0x48] sm:$0xff]  }
 0x1d1   :  { %v945_v42 = vmax.f32 %v4645_v41, %v917_v58  ;;  %v918_v45 = vmax.f32 %v850_v28, %v852_v31  ;;  %v4220_v18 = vpack.c.bf16 %v1007_v57, %v1006_v56  ;;  %v3349_v56 = vld [vmem:[%s4589_s5 + $0x8] sm:$0xff]   ;;  %v3350_v57 = vld [vmem:[%s4589_s5 + $0x50] sm:$0xff]   ;;  %v3352_v31 = vld [vmem:[%s4589_s5 + $0x58] sm:$0xff]  }
 0x1d2   :  { %v3343_v58 = vld [vmem:[%s4587_s3 + $0x270] ss:$8 sps:$4 sm:$0xff]   ;;  %v3355_v41 = vld [vmem:[%s4589_s5 + $0x20] sm:$0xff]  }
 0x1d3   :  { %v980_v15 = vadd.f32 %v3991_v40, %v945_v42  ;;  %v946_v20 = vmax.f32 %v4648_v59, %v918_v45  ;;  %v3351_v28 = vld [vmem:[%s4589_s5 + $0x10] sm:$0xff]   ;;  %v3356_v42 = vld [vmem:[%s4589_s5 + $0x68] sm:$0xff]  }
 0x1d4   :  { %1599 = vmatmul.mubr.bf16.gmra.mrb[24].mxu1 %v4054_v2  ;;  %v3357_v45 = vld [vmem:[%s4589_s5 + $0x28] sm:$0xff]  }
 0x1d5   :  { %v981_v21 = vadd.f32 %v3991_v40, %v946_v20  ;;  %v856_v60 = vpop.f32.mrb[108].mxu0  ;;  %1608 = vmatprep.mubr.bf16.mxu1 %v4124_v8  ;;  %v1008_v35 = vmax.f32 %v980_v15, 0.0  ;;  %v3402_v15 = vmov 0   ;;  %v3371_v59 = vld [vmem:[%s4589_s5 + $0x128] sm:$0xff]   ;;  %v3378_v20 = vld [vmem:[%s4589_s5 + $0x130] sm:$0xff]  }
 0x1d6   :  { %v858_v52 = vpop.f32.mrb[109].mxu0 }
 0x1d7   :  { %v1009_v36 = vmax.f32 %v981_v21, 0.0  ;;  %v919_v7 = vmax.f32 %v856_v60, %v858_v52  ;;  %v860_v46 = vpop.f32.mrb[110].mxu0  ;;  %v3381_v21 = vld [vmem:[%s4589_s5 + $0x138] sm:$0xff]  }
 0x1d8   :  { %v862_v49 = vpop.f32.mrb[111].mxu0 }
 0x1d9   :  { %v947_v0 = vmax.f32 %v4651_v9, %v919_v7  ;;  %v920_v38 = vmax.f32 %v860_v46, %v862_v49  ;;  %v4232_v37 = vpack.c.bf16 %v1009_v36, %v1008_v35 }
 0x1db   :  { %v982_v62 = vadd.f32 %v3991_v40, %v947_v0  ;;  %v948_v47 = vmax.f32 %v4654_v63, %v920_v38 }
 0x1dc   :  { %1609 = vmatmul.mubr.bf16.gmra.mrb[28].mxu1 %v4100_v14 }
 0x1dd   :  { %v983_v55 = vadd.f32 %v3991_v40, %v948_v47  ;;  %1618 = vmatprep.mubr.bf16.mxu1 %v4170_v17  ;;  %v1010_v10 = vmax.f32 %v982_v62, 0.0  ;;  %v3327_v40 = vld [vmem:[%s4587_s3 + $0x214] ss:$8 sps:$4 sm:$0xff]  }
 0x1df   :  { %v1011_v43 = vmax.f32 %v983_v55, 0.0 }
 0x1e1   :  { %v4241_v44 = vpack.c.bf16 %v1011_v43, %v1010_v10 }
 0x1e4   :  { %1619 = vmatmul.mubr.bf16.gmra.mrb[32].mxu1 %v4146_v27 }
 0x1e5   :  { %1628 = vmatprep.mubr.bf16.mxu1 %v4205_v12 }
 0x1ec   :  { %1629 = vmatmul.mubr.bf16.gmra.mrb[36].mxu1 %v4192_v39 }
 0x1ed   :  { %1671 = vmatprep.mubr.bf16.mxu1 %v4054_v2 }
 0x1f4   :  { %1672 = vmatmul.mubr.bf16.vlgmr.msra.gmra.mrb[0].mxu1 %v4035_v3  ;;  %v3347_v3 = vld [vmem:[%s4589_s5] sm:$0xff]  }
 0x1f5   :  { %1773 = vmatpush1.bf16.msra.mxu1 %v3322_v11  ;;  %1681 = vmatprep.mubr.bf16.mxu1 %v4100_v14 }
 0x1f6   :  { %1774 = vmatprep.subr.bf16.mxu1 %v3327_v40  ;;  %2899 = vmatpush3.bf16.msra.mxu0 %v3347_v3 }
 0x1f7   :  { %2900 = vmatprep.subr.bf16.mxu0 %v3348_v30 }
 0x1f9   :  { %1775 = vmatpush1.bf16.msra.mxu1 %v3325_v50 }
 0x1fa   :  { %1776 = vmatprep.subr.bf16.mxu1 %v3330_v51  ;;  %2901 = vmatpush3.bf16.msra.mxu0 %v3349_v56 }
 0x1fb   :  { %2902 = vmatprep.subr.bf16.mxu0 %v3350_v57 }
 0x1fc   :  { %1682 = vmatmul.mubr.bf16.gmra.mrb[4].mxu1 %v4078_v61 }
 0x1fd   :  { %1691 = vmatprep.mubr.bf16.mxu1 %v4146_v27  ;;  %1777 = vmatpush1.bf16.msra.mxu1 %v3328_v34 }
 0x1fe   :  { %1778 = vmatprep.subr.bf16.mxu1 %v3333_v16  ;;  %2903 = vmatpush3.bf16.msra.mxu0 %v3351_v28 }
 0x1ff   :  { %2904 = vmatprep.subr.bf16.mxu0 %v3352_v31 }
 0x201   :  { %1779 = vmatpush1.bf16.msra.mxu1 %v3331_v53 }
 0x202   :  { %1780 = vmatprep.subr.bf16.mxu1 %v3336_v54  ;;  %2905 = vmatpush3.bf16.msra.mxu0 %v3353_v32 }
 0x203   :  { %2906 = vmatprep.subr.bf16.mxu0 %v3354_v33 }
 0x204   :  { %1692 = vmatmul.mubr.bf16.gmra.mrb[8].mxu1 %v4124_v8 }
 0x205   :  { %1701 = vmatprep.mubr.bf16.mxu1 %v4192_v39  ;;  %1781 = vmatpush1.bf16.msra.mxu1 %v3334_v19 }
 0x206   :  { %1782 = vmatprep.subr.bf16.mxu1 %v3339_v1  ;;  %2907 = vmatpush3.bf16.msra.mxu0 %v3355_v41 }
 0x207   :  { %2908 = vmatprep.subr.bf16.mxu0 %v3356_v42 }
 0x209   :  { %1783 = vmatpush1.bf16.msra.mxu1 %v3337_v13  ;;  %v4434_v13 = vld [vmem:[%s4590_s4] ss:$0 sm:$0xff] }
 0x20a   :  { %1784 = vmatprep.subr.bf16.mxu1 %v3342_v22  ;;  %2909 = vmatpush3.bf16.msra.mxu0 %v3357_v45 }
 0x20c   :  { %1702 = vmatmul.mubr.bf16.gmra.mrb[12].mxu1 %v4170_v17 }
 0x20d   :  { %1711 = vmatprep.mubr.bf16.mxu1 %v4220_v18  ;;  %1785 = vmatpush1.bf16.msra.mxu1 %v3340_v25 }
 0x20e   :  { %1786 = vmatprep.subr.bf16.mxu1 %v3345_v29 }
 0x211   :  { %1787 = vmatpush1.bf16.msra.mxu1 %v3343_v58 }
 0x214   :  { %1712 = vmatmul.mubr.bf16.gmra.mrb[16].mxu1 %v4205_v12 }
 0x215   :  { %1721 = vmatprep.mubr.bf16.mxu1 %v4078_v61 }
 0x21c   :  { %1722 = vmatmul.mubr.bf16.gmra.mrb[20].mxu1 %v4054_v2  ;;  %v3358_v2 = vld [vmem:[%s4589_s5 + $0x70] sm:$0xff]  }
 0x21d   :  { %1731 = vmatprep.mubr.bf16.mxu1 %v4124_v8  ;;  %2910 = vmatprep.subr.bf16.mxu0 %v3358_v2 }
 0x224   :  { %1732 = vmatmul.mubr.bf16.gmra.mrb[24].mxu1 %v4100_v14 }
 0x225   :  { %1741 = vmatprep.mubr.bf16.mxu1 %v4170_v17 }
 0x22c   :  { %1742 = vmatmul.mubr.bf16.gmra.mrb[28].mxu1 %v4146_v27 }
 0x22d   :  { %1751 = vmatprep.mubr.bf16.mxu1 %v4205_v12 }
 0x234   :  { %1752 = vmatmul.mubr.bf16.gmra.mrb[32].mxu1 %v4192_v39 }
 0x235   :  { %1761 = vmatprep.mubr.bf16.mxu1 %v4232_v37 }
 0x23c   :  { %1762 = vmatmul.mubr.bf16.gmra.mrb[36].mxu1 %v4220_v18 }
 0x23d   :  { %1804 = vmatprep.mubr.bf16.mxu1 %v3402_v15 }
 0x244   :  { %1805 = vmatmul.mubr.bf16.vlgmr.msra.gmra.mrb[0].mxu1 %v4078_v61  ;;  %v3359_v61 = vld [vmem:[%s4589_s5 + $0x30] sm:$0xff]  }
 0x245   :  { %1814 = vmatprep.mubr.bf16.mxu1 %v3402_v15  ;;  %2911 = vmatpush3.bf16.msra.mxu0 %v3359_v61 }
 0x24c   :  { %1815 = vmatmul.mubr.bf16.gmra.mrb[4].mxu1 %v4124_v8  ;;  %v3360_v8 = vld [vmem:[%s4589_s5 + $0x100] sm:$0xff]  }
 0x24d   :  { %1824 = vmatprep.mubr.bf16.mxu1 %v3402_v15 }
 0x254   :  { %1825 = vmatmul.mubr.bf16.gmra.mrb[8].mxu1 %v4170_v17  ;;  %v3362_v17 = vld [vmem:[%s4589_s5 + $0x78] sm:$0xff]  }
 0x255   :  { %1834 = vmatprep.mubr.bf16.mxu1 %v3402_v15  ;;  %2912 = vmatprep.subr.bf16.mxu0 %v3362_v17 }
 0x25c   :  { %1835 = vmatmul.mubr.bf16.gmra.mrb[12].mxu1 %v4205_v12  ;;  %v3364_v12 = vld [vmem:[%s4589_s5 + $0x110] sm:$0xff]  }
 0x25d   :  { %1844 = vmatprep.mubr.bf16.mxu1 %v3402_v15 }
 0x264   :  { %1845 = vmatmul.mubr.bf16.gmra.mrb[16].mxu1 %v4232_v37 }
 0x265   :  { %1854 = vmatprep.mubr.bf16.mxu1 %v3402_v15 }
 0x26c   :  { %1855 = vmatmul.mubr.bf16.gmra.mrb[20].mxu1 %v4100_v14  ;;  %v3403_v14 = vmov 0.0  }
 0x26d   :  { %1864 = vmatprep.mubr.bf16.mxu1 %v3402_v15  ;;  %2969 = vmatprep.subr.bf16.mxu1 %v3403_v14 }
 0x26e   :  { %2970 = vmatpush3.bf16.msra.mxu1 %v3360_v8 }
 0x26f   :  { %2971 = vmatprep.subr.bf16.mxu1 %v3403_v14 }
 0x274   :  { %1865 = vmatmul.mubr.bf16.gmra.mrb[24].mxu1 %v4146_v27  ;;  %v3361_v27 = vld [vmem:[%s4589_s5 + $0x108] sm:$0xff]  }
 0x275   :  { %1874 = vmatprep.mubr.bf16.mxu1 %v3402_v15  ;;  %2972 = vmatpush3.bf16.msra.mxu1 %v3361_v27 }
 0x276   :  { %2973 = vmatprep.subr.bf16.mxu1 %v3403_v14 }
 0x279   :  { %2974 = vmatpush3.bf16.msra.mxu1 %v3364_v12 }
 0x27a   :  { %2975 = vmatprep.subr.bf16.mxu1 %v3403_v14 }
 0x27c   :  { %1875 = vmatmul.mubr.bf16.gmra.mrb[28].mxu1 %v4192_v39  ;;  %v3363_v39 = vld [vmem:[%s4589_s5 + $0x38] sm:$0xff]  }
 0x27d   :  { %1884 = vmatprep.mubr.bf16.mxu1 %v3402_v15  ;;  %2913 = vmatpush3.bf16.msra.mxu0 %v3363_v39 }
 0x27e   :  { %2920 = vmatprep.subr.bf16.mxu0 %v3367_v4 }
 0x284   :  { %1885 = vmatmul.mubr.bf16.gmra.mrb[32].mxu1 %v4220_v18  ;;  %v3365_v18 = vld [vmem:[%s4589_s5 + $0x118] sm:$0xff]  }
 0x285   :  { %1894 = vmatprep.mubr.bf16.mxu1 %v3402_v15  ;;  %2976 = vmatpush3.bf16.msra.mxu1 %v3365_v18 }
 0x286   :  { %2977 = vmatprep.subr.bf16.mxu1 %v3403_v14 }
 0x289   :  { %2978 = vmatpush3.bf16.msra.mxu1 %v3366_v5 }
 0x28a   :  { %2979 = vmatprep.subr.bf16.mxu1 %v3403_v14 }
 0x28c   :  { %1895 = vmatmul.mubr.bf16.gmra.mrb[36].mxu1 %v4241_v44 }
 0x28d   :  { %2980 = vmatpush3.bf16.msra.mxu1 %v3371_v59  ;;  %2985 = vmatprep.mubr.msk.bf16.mxu1 %vm3404_vm1, %v3403_v14 }
 0x28e   :  { %2981 = vmatprep.subr.bf16.mxu1 %v3403_v14 }
 0x291   :  { %2982 = vmatpush3.bf16.msra.mxu1 %v3378_v20 }
 0x292   :  { %2983 = vmatprep.subr.bf16.mxu1 %v3403_v14 }
 0x295   :  { %2984 = vmatpush3.bf16.msra.mxu1 %v3381_v21 }
 0x296   :  { %3009 = vmatprep.subr.bf16.mxu1 %v3403_v14 }
 0x317   :  { %v1806_v60 = vpop.f32.mrb[0].mxu1 }
 0x318   :  { %v1808_v52 = vpop.f32.mrb[1].mxu1 }
 0x319   :  { %v1905_v35 = vmax.f32 %v1806_v60, %v1808_v52  ;;  %v1810_v36 = vpop.f32.mrb[2].mxu1  ;;  %v3368_v52 = vld [vmem:[%s4589_s5 + $0x80] sm:$0xff]  }
 0x31a   :  { %v1812_v7 = vpop.f32.mrb[3].mxu1 }
 0x31b   :  { %v1906_v46 = vmax.f32 %v1810_v36, %v1812_v7 }
 0x31f   :  { %v1816_v49 = vpop.f32.mrb[4].mxu1 }
 0x320   :  { %v1818_v48 = vpop.f32.mrb[5].mxu1 }
 0x321   :  { %v1907_v6 = vmax.f32 %v1816_v49, %v1818_v48  ;;  %v1820_v9 = vpop.f32.mrb[6].mxu1  ;;  %v3370_v48 = vld [vmem:[%s4589_s5 + $0x88] sm:$0xff]  }
 0x322   :  { %v1822_v0 = vpop.f32.mrb[7].mxu1 }
 0x323   :  { %v1908_v38 = vmax.f32 %v1820_v9, %v1822_v0  ;;  %v3372_v9 = vld [vmem:[%s4589_s5 + $0xd0] sm:$0xff]  }
 0x327   :  { %v1826_v37 = vpop.f32.mrb[8].mxu1 }
 0x328   :  { %v1828_v62 = vpop.f32.mrb[9].mxu1 }
 0x329   :  { %v1909_v23 = vmax.f32 %v1826_v37, %v1828_v62  ;;  %v1830_v24 = vpop.f32.mrb[10].mxu1 }
 0x32a   :  { %v1832_v63 = vpop.f32.mrb[11].mxu1 }
 0x32b   :  { %v1910_v47 = vmax.f32 %v1830_v24, %v1832_v63 }
 0x32f   :  { %v4407_v55 = vpop.f32.mrb[12].mxu1 }
 0x330   :  { %v4409_v10 = vpop.f32.mrb[13].mxu1 }
 0x331   :  { %v1911_v43 = vmax.f32 %v4407_v55, %v4409_v10  ;;  %v4413_v44 = vpop.f32.mrb[14].mxu1 }
 0x332   :  { %v4415_v11 = vpop.f32.mrb[15].mxu1 }
 0x333   :  { %v1912_v40 = vmax.f32 %v4413_v44, %v4415_v11 }
 0x337   :  { %v4419_v50 = vpop.f32.mrb[16].mxu1 }
 0x338   :  { %v4421_v51 = vpop.f32.mrb[17].mxu1 }
 0x339   :  { %v1913_v26 = vmax.f32 %v4419_v50, %v4421_v51  ;;  %v4425_v3 = vpop.f32.mrb[18].mxu1  ;;  %v3380_v51 = vld [vmem:[%s4589_s5 + $0xa8] sm:$0xff]  }
 0x33a   :  { %v4427_v34 = vpop.f32.mrb[19].mxu1 }
 0x33b   :  { %v1914_v16 = vmax.f32 %v4425_v3, %v4427_v34  ;;  %v3383_v3 = vld [vmem:[%s4589_s5 + $0xb0] sm:$0xff]   ;;  %v3384_v34 = vld [vmem:[%s4589_s5 + $0xf8] sm:$0xff]  }
 0x33f   :  { %v1856_v53 = vpop.f32.mrb[20].mxu1 }
 0x340   :  { %v1858_v54 = vpop.f32.mrb[21].mxu1 }
 0x341   :  { %v1915_v19 = vmax.f32 %v1856_v53, %v1858_v54  ;;  %v1860_v1 = vpop.f32.mrb[22].mxu1  ;;  %v3373_v53 = vld [vmem:[%s4589_s5 + $0x90] sm:$0xff]   ;;  %v3374_v54 = vld [vmem:[%s4589_s5 + $0xd8] sm:$0xff]  }
 0x342   :  { %v1862_v22 = vpop.f32.mrb[23].mxu1 }
 0x343   :  { %v1925_v25 = vmax.f32 %v1905_v35, %v1915_v19  ;;  %v1916_v29 = vmax.f32 %v1860_v1, %v1862_v22  ;;  %v3369_v35 = vld [vmem:[%s4589_s5 + $0xc8] sm:$0xff]  }
 0x345   :  { %v1942_v30 = vadd.f32 %v4434_v13, %v1925_v25  ;;  %v1926_v56 = vmax.f32 %v1906_v46, %v1916_v29  ;;  %v3376_v25 = vld [vmem:[%s4589_s5 + $0xe0] sm:$0xff]  }
 0x347   :  { %v1943_v57 = vadd.f32 %v4434_v13, %v1926_v56  ;;  %v1866_v58 = vpop.f32.mrb[24].mxu1  ;;  %v1952_v31 = vmax.f32 %v1942_v30, 0.0 }
 0x348   :  { %v1868_v28 = vpop.f32.mrb[25].mxu1 }
 0x349   :  { %v1953_v32 = vmax.f32 %v1943_v57, 0.0  ;;  %v1917_v33 = vmax.f32 %v1866_v58, %v1868_v28  ;;  %v1870_v41 = vpop.f32.mrb[26].mxu1  ;;  %v3377_v28 = vld [vmem:[%s4589_s5 + $0xa0] sm:$0xff]  }
 0x34a   :  { %v1872_v42 = vpop.f32.mrb[27].mxu1 }
 0x34b   :  { %v1962_v45 = vpack.c.bf16 %v1953_v32, %v1952_v31  ;;  %v1927_v15 = vmax.f32 %v1907_v6, %v1917_v33  ;;  %v1918_v2 = vmax.f32 %v1870_v41, %v1872_v42  ;;  %v3379_v31 = vld [vmem:[%s4589_s5 + $0xe8] sm:$0xff]  }
 0x34d   :  { %v1944_v61 = vadd.f32 %v4434_v13, %v1927_v15  ;;  %v1928_v8 = vmax.f32 %v1908_v38, %v1918_v2  ;;  %v3387_v15 = vld [vmem:[%s4591_s7 + $0x8] sm:$0xff]   ;;  %v3388_v2 = vld [vmem:[%s4591_s7 + $0x10] sm:$0xff]  }
 0x34f   :  { %v1945_v27 = vadd.f32 %v4434_v13, %v1928_v8  ;;  %v1876_v17 = vpop.f32.mrb[28].mxu1  ;;  %v1954_v12 = vmax.f32 %v1944_v61, 0.0  ;;  %v3389_v61 = vld [vmem:[%s4591_s7 + $0x18] sm:$0xff]   ;;  %v3390_v8 = vld [vmem:[%s4591_s7 + $0x20] sm:$0xff]  }
 0x350   :  { %v1878_v39 = vpop.f32.mrb[29].mxu1 }
 0x351   :  { %v1955_v18 = vmax.f32 %v1945_v27, 0.0  ;;  %v1919_v4 = vmax.f32 %v1876_v17, %v1878_v39  ;;  %v1880_v5 = vpop.f32.mrb[30].mxu1  ;;  %v3391_v27 = vld [vmem:[%s4591_s7 + $0x28] sm:$0xff]   ;;  %v3392_v17 = vld [vmem:[%s4591_s7 + $0x30] sm:$0xff]   ;;  %v3393_v39 = vld [vmem:[%s4591_s7 + $0x38] sm:$0xff]  }
 0x352   :  { %v1882_v59 = vpop.f32.mrb[31].mxu1 }
 0x353   :  { %v1929_v20 = vmax.f32 %v1909_v23, %v1919_v4  ;;  %v1920_v21 = vmax.f32 %v1880_v5, %v1882_v59  ;;  %v1963_v60 = vpack.c.bf16 %v1955_v18, %v1954_v12  ;;  %v3394_v12 = vld [vmem:[%s4592_s9] sm:$0xff]   ;;  %v3395_v18 = vld [vmem:[%s4592_s9 + $0x8] sm:$0xff]   ;;  %v3396_v4 = vld [vmem:[%s4592_s9 + $0x10] sm:$0xff]  }
 0x354   :  { %v3397_v5 = vld [vmem:[%s4592_s9 + $0x18] sm:$0xff]   ;;  %v3398_v59 = vld [vmem:[%s4592_s9 + $0x20] sm:$0xff]  }
 0x355   :  { %v1946_v36 = vadd.f32 %v4434_v13, %v1929_v20  ;;  %v1930_v7 = vmax.f32 %v1910_v47, %v1920_v21  ;;  %2326 = vmatprep.mubr.bf16.mxu0 %v1963_v60  ;;  %v3399_v20 = vld [vmem:[%s4592_s9 + $0x28] sm:$0xff]  }
 0x356   :  { %2327 = vmatmul.mubr.bf16.vlgmr.msra.gmra.mrb[112].mxu0 %v1962_v45 }
 0x357   :  { %v1947_v46 = vadd.f32 %v4434_v13, %v1930_v7  ;;  %2921 = vmatpush3.bf16.msra.mxu0 %v3368_v52  ;;  %v1886_v49 = vpop.f32.mrb[32].mxu1  ;;  %v1956_v0 = vmax.f32 %v1946_v36, 0.0 }
 0x358   :  { %v1888_v6 = vpop.f32.mrb[33].mxu1  ;;  %2922 = vmatprep.subr.bf16.mxu0 %v3369_v35 }
 0x359   :  { %v1957_v38 = vmax.f32 %v1947_v46, 0.0  ;;  %v1921_v37 = vmax.f32 %v1886_v49, %v1888_v6  ;;  %v1890_v62 = vpop.f32.mrb[34].mxu1 }
 0x35a   :  { %v1892_v23 = vpop.f32.mrb[35].mxu1 }
 0x35b   :  { %v1964_v24 = vpack.c.bf16 %v1957_v38, %v1956_v0  ;;  %v1931_v63 = vmax.f32 %v1911_v43, %v1921_v37  ;;  %v1922_v47 = vmax.f32 %v1890_v62, %v1892_v23  ;;  %2923 = vmatpush3.bf16.msra.mxu0 %v3370_v48  ;;  %v3375_v43 = vld [vmem:[%s4589_s5 + $0x98] sm:$0xff]  }
 0x35c   :  { %2924 = vmatprep.subr.bf16.mxu0 %v3372_v9  ;;  %v2839_v9 = vld [vmem:[%s4593_s6] ss:$0 sm:$0xff] }
 0x35d   :  { %v1948_v19 = vadd.f32 %v4434_v13, %v1931_v63  ;;  %v1932_v1 = vmax.f32 %v1912_v40, %v1922_v47 }
 0x35f   :  { %v1949_v55 = vadd.f32 %v4434_v13, %v1932_v1  ;;  %2925 = vmatpush3.bf16.msra.mxu0 %v3373_v53  ;;  %v1896_v10 = vpop.f32.mrb[36].mxu1  ;;  %v1958_v29 = vmax.f32 %v1948_v19, 0.0 }
 0x360   :  { %v1898_v22 = vpop.f32.mrb[37].mxu1  ;;  %2926 = vmatprep.subr.bf16.mxu0 %v3374_v54 }
 0x361   :  { %v1959_v30 = vmax.f32 %v1949_v55, 0.0  ;;  %v1923_v56 = vmax.f32 %v1896_v10, %v1898_v22  ;;  %v1900_v57 = vpop.f32.mrb[38].mxu1  ;;  %v3400_v22 = vld [vmem:[%s4592_s9 + $0x30] sm:$0xff]  }
 0x362   :  { %v1902_v44 = vpop.f32.mrb[39].mxu1 }
 0x363   :  { %v1933_v11 = vmax.f32 %v1913_v26, %v1923_v56  ;;  %v1924_v40 = vmax.f32 %v1900_v57, %v1902_v44  ;;  %2927 = vmatpush3.bf16.msra.mxu0 %v3375_v43  ;;  %v1965_v58 = vpack.c.bf16 %v1959_v30, %v1958_v29  ;;  %v3382_v26 = vld [vmem:[%s4589_s5 + $0xf0] sm:$0xff]   ;;  %v2880_v29 = vld [vmem:[%s4594_s8] ss:$0 sm:$0xff] }
 0x364   :  { %2928 = vmatprep.subr.bf16.mxu0 %v3376_v25  ;;  %v3401_v25 = vld [vmem:[%s4592_s9 + $0x38] sm:$0xff]  }
 0x365   :  { %v1950_v32 = vadd.f32 %v4434_v13, %v1933_v11  ;;  %v1934_v33 = vmax.f32 %v1914_v16, %v1924_v40  ;;  %2367 = vmatprep.mubr.bf16.mxu0 %v1965_v58  ;;  %v3385_v16 = vld [vmem:[%s4589_s5 + $0xb8] sm:$0xff]  }
 0x367   :  { %v1951_v50 = vadd.f32 %v4434_v13, %v1934_v33  ;;  %2929 = vmatpush3.bf16.msra.mxu0 %v3377_v28  ;;  %v1960_v41 = vmax.f32 %v1950_v32, 0.0  ;;  %v3386_v13 = vld [vmem:[%s4591_s7] sm:$0xff]  }
 0x368   :  { %2930 = vmatprep.subr.bf16.mxu0 %v3379_v31 }
 0x369   :  { %v1961_v42 = vmax.f32 %v1951_v50, 0.0 }
 0x36b   :  { %v1966_v45 = vpack.c.bf16 %v1961_v42, %v1960_v41  ;;  %2931 = vmatpush3.bf16.msra.mxu0 %v3380_v51 }
 0x36c   :  { %2932 = vmatprep.subr.bf16.mxu0 %v3382_v26 }
 0x36d   :  { %2986 = vmatmul.mubr.bf16.vlgmr.msra.gmra.mrb[40].mxu1 %v1966_v45 }
 0x36e   :  { %3025 = vmatprep.mubr.msk.bf16.mxu1 %vm3404_vm1, %v3403_v14  ;;  %3010 = vmatpush3.bf16.msra.mxu1 %v3394_v12 }
 0x36f   :  { %2933 = vmatpush3.bf16.msra.mxu0 %v3383_v3  ;;  %3011 = vmatprep.subr.bf16.mxu1 %v3403_v14 }
 0x370   :  { %2934 = vmatprep.subr.bf16.mxu0 %v3384_v34 }
 0x372   :  { %3012 = vmatpush3.bf16.msra.mxu1 %v3395_v18 }
 0x373   :  { %2935 = vmatpush3.bf16.msra.mxu0 %v3385_v16  ;;  %3013 = vmatprep.subr.bf16.mxu1 %v3403_v14 }
 0x374   :  { %2989 = vmatprep.subr.bf16.mxu0 %v3403_v14 }
 0x376   :  { %2368 = vmatmul.mubr.bf16.vlgmr.msra.gmra.mrb[116].mxu0 %v1964_v24  ;;  %3014 = vmatpush3.bf16.msra.mxu1 %v3396_v4 }
 0x377   :  { %3005 = vmatprep.mubr.msk.bf16.mxu0 %vm3404_vm1, %v3403_v14  ;;  %2990 = vmatpush3.bf16.msra.mxu0 %v3386_v13 }
 0x378   :  { %2991 = vmatprep.subr.bf16.mxu0 %v3403_v14  ;;  %3015 = vmatprep.subr.bf16.mxu1 %v3403_v14 }
 0x37a   :  { %3016 = vmatpush3.bf16.msra.mxu1 %v3397_v5 }
 0x37b   :  { %2992 = vmatpush3.bf16.msra.mxu0 %v3387_v15  ;;  %3017 = vmatprep.subr.bf16.mxu1 %v3403_v14 }
 0x37c   :  { %2993 = vmatprep.subr.bf16.mxu0 %v3403_v14 }
 0x37e   :  { %3018 = vmatpush3.bf16.msra.mxu1 %v3398_v59 }
 0x37f   :  { %2994 = vmatpush3.bf16.msra.mxu0 %v3388_v2  ;;  %3019 = vmatprep.subr.bf16.mxu1 %v3403_v14 }
 0x380   :  { %2995 = vmatprep.subr.bf16.mxu0 %v3403_v14 }
 0x382   :  { %3020 = vmatpush3.bf16.msra.mxu1 %v3399_v20 }
 0x383   :  { %2996 = vmatpush3.bf16.msra.mxu0 %v3389_v61  ;;  %3021 = vmatprep.subr.bf16.mxu1 %v3403_v14 }
 0x384   :  { %2997 = vmatprep.subr.bf16.mxu0 %v3403_v14 }
 0x386   :  { %3022 = vmatpush3.bf16.msra.mxu1 %v3400_v22 }
 0x387   :  { %2998 = vmatpush3.bf16.msra.mxu0 %v3390_v8  ;;  %3023 = vmatprep.subr.bf16.mxu1 %v3403_v14 }
 0x388   :  { %2999 = vmatprep.subr.bf16.mxu0 %v3403_v14 }
 0x38a   :  { %3024 = vmatpush3.bf16.msra.mxu1 %v3401_v25 }
 0x38b   :  { %3000 = vmatpush3.bf16.msra.mxu0 %v3391_v27 }
 0x38c   :  { %3001 = vmatprep.subr.bf16.mxu0 %v3403_v14 }
 0x38f   :  { %3002 = vmatpush3.bf16.msra.mxu0 %v3392_v17 }
 0x390   :  { %3003 = vmatprep.subr.bf16.mxu0 %v3403_v14  ;;  %v2889_v14 = vld [vmem:[%s4595_s10] ss:$0 sm:$0xff] }
 0x393   :  { %3004 = vmatpush3.bf16.msra.mxu0 %v3393_v39 }
 0x429   :  { %v2914_v21 = vpop.f32.mrb[112].mxu0 }
 0x42a   :  { %v2915_v60 = vpop.f32.mrb[113].mxu0 }
 0x42b   :  { %v2916_v52 = vadd.f32 %v2915_v60, %v2914_v21  ;;  %v2917_v35 = vpop.f32.mrb[114].mxu0 }
 0x42c   :  { %v2918_v36 = vpop.f32.mrb[115].mxu0 }
 0x42d   :  { %v2919_v7 = vadd.f32 %v2918_v36, %v2917_v35  ;;  %v2329_v37 = vadd.f32 %v2916_v52, %v2839_v9 }
 0x42f   :  { %v2332_v63 = vadd.f32 %v2919_v7, %v2839_v9 }
 0x440   :  { %v2410_v46 = vpop.f32.mrb[40].mxu1 }
 0x441   :  { %v2987_v49 = vpop.f32.mrb[41].mxu1 }
 0x442   :  { %v2413_v48 = vpop.f32.mrb[42].mxu1 }
 0x443   :  { %v2988_v6 = vpop.f32.mrb[43].mxu1 }
 0x449   :  { %v2936_v0 = vpop.f32.mrb[116].mxu0 }
 0x44a   :  { %v2937_v38 = vpop.f32.mrb[117].mxu0 }
 0x44b   :  { %v2938_v62 = vadd.f32 %v2937_v38, %v2936_v0  ;;  %v2939_v23 = vpop.f32.mrb[118].mxu0 }
 0x44c   :  { %v2940_v24 = vpop.f32.mrb[119].mxu0 }
 0x44d   :  { %v2370_v47 = vadd.f32 %v2938_v62, %v2329_v37  ;;  %v2941_v53 = vadd.f32 %v2940_v24, %v2939_v23 }
 0x44f   :  { %v2411_v54 = vadd.f32 %v2410_v46, %v2370_v47  ;;  %v2373_v19 = vadd.f32 %v2941_v53, %v2332_v63 }
 0x451   :  { %v2414_v1 = vadd.f32 %v2413_v48, %v2373_v19  ;;  %v2417_v55 = vmax.f32 %v2411_v54, 0.0 }
 0x453   :  { %v2418_v10 = vmax.f32 %v2414_v1, 0.0 }
 0x455   :  { %v2419_v43 = vpack.c.bf16 %v2418_v10, %v2417_v55 }
 0x457   :  { %3006 = vmatmul.mubr.bf16.vlgmr.msra.gmra.mrb[120].mxu0 %v2419_v43 }
 0x52a   :  { %v2525_v30 = vpop.f32.mrb[120].mxu0 }
 0x52b   :  { %v2526_v56 = vadd.f32 %v2880_v29, %v2525_v30  ;;  %v3007_v57 = vpop.f32.mrb[121].mxu0 }
 0x52c   :  { %v2528_v44 = vpop.f32.mrb[122].mxu0 }
 0x52d   :  { %v2529_v11 = vadd.f32 %v2880_v29, %v2528_v44  ;;  %v3008_v40 = vpop.f32.mrb[123].mxu0  ;;  %v2532_v58 = vmax.f32 %v2526_v56, 0.0 }
 0x52f   :  { %v2533_v28 = vmax.f32 %v2529_v11, 0.0 }
 0x531   :  { %v2534_v31 = vpack.c.bf16 %v2533_v28, %v2532_v58 }
 0x533   :  { %3026 = vmatmul.mubr.bf16.vlgmr.msra.gmra.mrb[44].mxu1 %v2534_v31 }
 0x606   :  { %v2640_v32 = vpop.f32.mrb[44].mxu1 }
 0x607   :  { %v2641_v33 = vadd.f32 %v2889_v14, %v2640_v32  ;;  %v3027_v50 = vpop.f32.mrb[45].mxu1 }
 0x608   :  { %v2643_v51 = vpop.f32.mrb[46].mxu1 }
 0x609   :  { %2647 = vst [vmem:[%s4596_s11] sm:$0xff] %v2641_v33  ;;  %v2644_v26 = vadd.f32 %v2889_v14, %v2643_v51  ;;  %v3028_v41 = vpop.f32.mrb[47].mxu1 }
 0x60b   :  { %2648 = vst [vmem:[%s4596_s11 + $0x8] sm:$0xff] %v2644_v26 }

</bundles_post_ra>
